<compile_context>
chip_gen: v7x
topology: tpu7x:2x2x1
jax: 0.10.0
libtpu: 0.0.40
codegen_flags: <defaults>
</compile_context>

<pallas_src>
import functools

import jax
import jax.numpy as jnp
from jax.experimental import pallas as pl
from jax.experimental.pallas import tpu as pltpu


def _round_up(x, m):
    return (x + m - 1) // m * m


def _vae_forward_kernel(
    L_ref, eps_ref, U_ref, pol_ref,
    ew1_ref, eb1_ref, ew2_ref, eb2_ref,
    dw1z_ref, dw1y_ref, db1_ref,
    tw2_ref, tb2_ref, fw2_ref, fb2_ref,
    enc_out_ref, slab_ref,
    *, latent_dim, n_weak):
    L = L_ref[...]                                   # (TB, n_weak)

    # ---- encoder: Linear -> ReLU -> Linear ----
    h = jnp.dot(L, ew1_ref[...], preferred_element_type=jnp.float32) + eb1_ref[...]
    h = jnp.maximum(h, 0.0)
    enc = jnp.dot(h, ew2_ref[...], preferred_element_type=jnp.float32) + eb2_ref[...]
    enc_out_ref[...] = enc                           # (TB, 2*latent_dim+1)

    mu_z = enc[:, 0:latent_dim]                      # (TB, latent_dim)
    logvar_z = enc[:, latent_dim:2 * latent_dim]     # (TB, latent_dim)
    p = enc[:, 2 * latent_dim:2 * latent_dim + 1]    # (TB, 1)

    # ---- reparameterize (gaussian) ----
    std = jnp.exp(0.5 * logvar_z)
    z = mu_z + eps_ref[...] * std                    # (TB, latent_dim)

    # ---- reparameterize_bool (gumbel-sigmoid) ----
    e = 1e-8
    U = U_ref[...]                                   # (TB, 1)
    gumbel = -jnp.log(-jnp.log(U + e) + e)
    y = jax.nn.sigmoid(p + gumbel)                   # (TB, 1)

    # ---- fused decoders, first layer (one matmul for true+false) ----
    # latents = [z, y]; the y column is a rank-1 broadcast term, kept off the MXU.
    h1 = (jnp.dot(z, dw1z_ref[...], preferred_element_type=jnp.float32)
          + y * dw1y_ref[...]                        # (TB,1)*(1,2*n_weak)
          + db1_ref[...])
    h1 = jnp.maximum(h1, 0.0)                        # (TB, 2*n_weak)
    h1_t = h1[:, 0:n_weak]
    h1_f = h1[:, n_weak:2 * n_weak]

    # ---- second decoder layers + sigmoid ----
    mu_true = jax.nn.sigmoid(
        jnp.dot(h1_t, tw2_ref[...], preferred_element_type=jnp.float32) + tb2_ref[...])
    mu_false = jax.nn.sigmoid(
        jnp.dot(h1_f, fw2_ref[...], preferred_element_type=jnp.float32) + fb2_ref[...])

    # ---- reconstruction mix (simplified) ----
    pol = pol_ref[...]                               # (1, n_weak)
    a = 1.0 - pol - y + 2.0 * pol * y                # == pol*y + (1-pol)*(1-y)
    recon = mu_false + a * (mu_true - mu_false)
    recon = jnp.clip(recon, 1e-8, 1.0 - 1e-8)

    # single lane-dense output slab: [recon | mu_true | mu_false]
    slab_ref[:, 0:n_weak] = recon
    slab_ref[:, n_weak:2 * n_weak] = mu_true
    slab_ref[:, 2 * n_weak:3 * n_weak] = mu_false


def weak_label_vae_forward(L, eps, U, params, latent_dim, *, tile_b=1024):
    """Run the WeakLabelVAE forward pass as a batch-gridded Pallas TPU kernel."""
    B, n_weak = L.shape
    enc_dim = 2 * latent_dim + 1

    # Tile the batch axis; keep tiles a multiple of 8 sublanes and pad B up.
    tile_b = max(8, min(int(tile_b), _round_up(B, 8)))
    tile_b = _round_up(tile_b, 8)
    Bp = _round_up(B, tile_b)
    if Bp != B:
        pad = Bp - B
        L = jnp.pad(L, ((0, pad), (0, 0)))
        eps = jnp.pad(eps, ((0, pad), (0, 0)))
        U = jnp.pad(U, ((0, pad), (0, 0)), constant_values=0.5)
    grid = (Bp // tile_b,)

    L = L.astype(jnp.float32)
    eps = eps.astype(jnp.float32)
    U = U.astype(jnp.float32)

    # Fuse the two decoders' first-layer weights in the wrapper (not in-kernel).
    dec_t_w1 = params["dec_t_w1"]
    dec_f_w1 = params["dec_f_w1"]
    dw1z = jnp.concatenate([dec_t_w1[:latent_dim], dec_f_w1[:latent_dim]], axis=1)
    dw1y = jnp.concatenate([dec_t_w1[latent_dim:latent_dim + 1],
                            dec_f_w1[latent_dim:latent_dim + 1]], axis=1)
    db1 = jnp.concatenate([params["dec_t_b1"], params["dec_f_b1"]], axis=1)

    inputs = (
        L, eps, U, params["polarities"],
        params["enc_w1"], params["enc_b1"], params["enc_w2"], params["enc_b2"],
        dw1z, dw1y, db1,
        params["dec_t_w2"], params["dec_t_b2"],
        params["dec_f_w2"], params["dec_f_b2"],
    )

    def batch_spec(feat):
        return pl.BlockSpec((tile_b, feat), lambda i: (i, 0))

    def resident_spec(shape):
        return pl.BlockSpec(shape, lambda i: (0, 0))

    in_specs = [
        batch_spec(n_weak),                      # L
        batch_spec(latent_dim),                  # eps
        batch_spec(1),                           # U
        resident_spec((1, n_weak)),              # polarities
        resident_spec((n_weak, n_weak)),         # enc_w1
        resident_spec((1, n_weak)),              # enc_b1
        resident_spec((n_weak, enc_dim)),        # enc_w2
        resident_spec((1, enc_dim)),             # enc_b2
        resident_spec((latent_dim, 2 * n_weak)), # dw1z (fused)
        resident_spec((1, 2 * n_weak)),          # dw1y (fused)
        resident_spec((1, 2 * n_weak)),          # db1  (fused)
        resident_spec((n_weak, n_weak)),         # dec_t_w2
        resident_spec((1, n_weak)),              # dec_t_b2
        resident_spec((n_weak, n_weak)),         # dec_f_w2
        resident_spec((1, n_weak)),              # dec_f_b2
    ]
    out_specs = (
        batch_spec(enc_dim),                     # encoder output
        batch_spec(3 * n_weak),                  # recon | mu_true | mu_false
    )
    out_shape = (
        jax.ShapeDtypeStruct((Bp, enc_dim), jnp.float32),
        jax.ShapeDtypeStruct((Bp, 3 * n_weak), jnp.float32),
    )

    kernel = functools.partial(_vae_forward_kernel,
                               latent_dim=latent_dim, n_weak=n_weak)
    enc_out, slab = pl.pallas_call(
        kernel,
        out_shape=out_shape,
        grid_spec=pltpu.PrefetchScalarGridSpec(
            num_scalar_prefetch=0,
            grid=grid,
            in_specs=in_specs,
            out_specs=out_specs,
        ),
        compiler_params=pltpu.CompilerParams(
            dimension_semantics=("parallel",),
            vmem_limit_bytes=32 * 1024 * 1024,
        ),
    )(*inputs)

    enc_out = enc_out[:B]
    slab = slab[:B]
    mu_z = enc_out[:, 0:latent_dim]
    logvar_z = enc_out[:, latent_dim:2 * latent_dim]
    p = enc_out[:, 2 * latent_dim:2 * latent_dim + 1]
    recon = slab[:, 0:n_weak]
    mu_true = slab[:, n_weak:2 * n_weak]
    mu_false = slab[:, 2 * n_weak:3 * n_weak]
    return recon, mu_z, logvar_z, p, mu_true, mu_false


def _reference_forward(L, eps, U, params, latent_dim):
    """Plain-JAX reference mirroring the PyTorch forward, for validation."""
    h = jax.nn.relu(L @ params["enc_w1"] + params["enc_b1"])
    enc = h @ params["enc_w2"] + params["enc_b2"]
    mu_z = enc[:, :latent_dim]
    logvar_z = enc[:, latent_dim:2 * latent_dim]
    p = enc[:, 2 * latent_dim:2 * latent_dim + 1]
    z = mu_z + eps * jnp.exp(0.5 * logvar_z)
    e = 1e-8
    g = -jnp.log(-jnp.log(U + e) + e)
    y = jax.nn.sigmoid(p + g)
    latents = jnp.concatenate([z, y], axis=1)

    def dec(w1, b1, w2, b2):
        h1 = jax.nn.relu(latents @ w1 + b1)
        return jax.nn.sigmoid(h1 @ w2 + b2)

    mu_true = dec(params["dec_t_w1"], params["dec_t_b1"],
                  params["dec_t_w2"], params["dec_t_b2"])
    mu_false = dec(params["dec_f_w1"], params["dec_f_b1"],
                   params["dec_f_w2"], params["dec_f_b2"])
    pol = params["polarities"]
    recon = ((pol * y + (1 - pol) * (1 - y)) * mu_true
             + ((1 - pol) * y + pol * (1 - y)) * mu_false)
    recon = jnp.clip(recon, 1e-8, 1 - 1e-8)
    return recon, mu_z, logvar_z, p, mu_true, mu_false


def _init_params(key, n_weak, latent_dim, polarities):
    """Deterministic synthetic parameter init (shapes per nn.Module __init__)."""
    ks = jax.random.split(key, 12)
    s = 0.3

    def lin(kw, kb, fan_in, fan_out):
        w = s * jax.random.normal(kw, (fan_in, fan_out), dtype=jnp.float32)
        b = s * jax.random.normal(kb, (1, fan_out), dtype=jnp.float32)
        return w, b

    enc_w1, enc_b1 = lin(ks[0], ks[1], n_weak, n_weak)
    enc_w2, enc_b2 = lin(ks[2], ks[3], n_weak, 2 * latent_dim + 1)
    dec_t_w1, dec_t_b1 = lin(ks[4], ks[5], latent_dim + 1, n_weak)
    dec_t_w2, dec_t_b2 = lin(ks[6], ks[7], n_weak, n_weak)
    dec_f_w1, dec_f_b1 = lin(ks[8], ks[9], latent_dim + 1, n_weak)
    dec_f_w2, dec_f_b2 = lin(ks[10], ks[11], n_weak, n_weak)
    return dict(
        polarities=jnp.asarray(polarities, dtype=jnp.float32).reshape(1, n_weak),
        enc_w1=enc_w1, enc_b1=enc_b1, enc_w2=enc_w2, enc_b2=enc_b2,
        dec_t_w1=dec_t_w1, dec_t_b1=dec_t_b1, dec_t_w2=dec_t_w2, dec_t_b2=dec_t_b2,
        dec_f_w1=dec_f_w1, dec_f_b1=dec_f_b1, dec_f_w2=dec_f_w2, dec_f_b2=dec_f_b2,
    )


if __name__ == "__main__":
    # Small shapes consistent with the module: n_weak=8 labeling functions,
    # latent_dim=4, cardinality fixed at 2.  B=500 with tile_b=128 exercises
    # the batch grid (4 tiles) and the pad/slice path.
    B, n_weak, latent_dim = 500, 8, 4
    polarities = [1, 0, 1, 1, 0, 1, 0, 1]

    root = jax.random.PRNGKey(0)
    k_param, k_L, k_eps, k_U = jax.random.split(root, 4)

    params = _init_params(k_param, n_weak, latent_dim, polarities)

    # L is binarized (L > 0.5 -> float) in _convert_L; emulate that here.
    L = (jax.random.uniform(k_L, (B, n_weak)) > 0.5).astype(jnp.float32)
    eps = jax.random.normal(k_eps, (B, latent_dim), dtype=jnp.float32)
    U = jax.random.uniform(k_U, (B, 1), dtype=jnp.float32)

    outs = weak_label_vae_forward(L, eps, U, params, latent_dim, tile_b=128)
    outs = jax.block_until_ready(outs)

    refs = _reference_forward(L, eps, U, params, latent_dim)
    names = ["weak_reconstructed", "mu_z", "logvar_z", "p", "mu_true", "mu_false"]
    for name, o, r in zip(names, outs, refs):
        assert o.shape == r.shape, (name, o.shape, r.shape)
        assert jnp.allclose(o, r, atol=1e-5, rtol=1e-5), name

    print("KERNEL_OK")
</pallas_src>

<mosaic_0001>
module attributes {stable_mosaic.version = 11 : i64} {
  func.func @_vae_forward_kernel(%arg0: i32, %arg1: memref<128x8xf32, #tpu.memory_space<vmem>>, %arg2: memref<128x4xf32, #tpu.memory_space<vmem>>, %arg3: memref<128x1xf32, #tpu.memory_space<vmem>>, %arg4: memref<1x8xf32, #tpu.memory_space<vmem>>, %arg5: memref<8x8xf32, #tpu.memory_space<vmem>>, %arg6: memref<1x8xf32, #tpu.memory_space<vmem>>, %arg7: memref<8x9xf32, #tpu.memory_space<vmem>>, %arg8: memref<1x9xf32, #tpu.memory_space<vmem>>, %arg9: memref<4x16xf32, #tpu.memory_space<vmem>>, %arg10: memref<1x16xf32, #tpu.memory_space<vmem>>, %arg11: memref<1x16xf32, #tpu.memory_space<vmem>>, %arg12: memref<8x8xf32, #tpu.memory_space<vmem>>, %arg13: memref<1x8xf32, #tpu.memory_space<vmem>>, %arg14: memref<8x8xf32, #tpu.memory_space<vmem>>, %arg15: memref<1x8xf32, #tpu.memory_space<vmem>>, %arg16: memref<128x9xf32, #tpu.memory_space<vmem>>, %arg17: memref<128x24xf32, #tpu.memory_space<vmem>>) attributes {dimension_semantics = [#tpu.dimension_semantics<parallel>], iteration_bounds = array<i64: 4>, scalar_prefetch = 0 : i64, scratch_operands = 0 : i64, tpu.core_type = #tpu.core_type<tc>, window_params = [{transform_indices = @transform_0, window_bounds = array<i64: 128, 8>}, {transform_indices = @transform_1, window_bounds = array<i64: 128, 4>}, {transform_indices = @transform_2, window_bounds = array<i64: 128, 1>}, {pipeline_mode = #tpu.pipeline_mode<synchronous>, transform_indices = @transform_3, window_bounds = array<i64: 1, 8>}, {pipeline_mode = #tpu.pipeline_mode<synchronous>, transform_indices = @transform_4, window_bounds = array<i64: 8, 8>}, {pipeline_mode = #tpu.pipeline_mode<synchronous>, transform_indices = @transform_5, window_bounds = array<i64: 1, 8>}, {pipeline_mode = #tpu.pipeline_mode<synchronous>, transform_indices = @transform_6, window_bounds = array<i64: 8, 9>}, {pipeline_mode = #tpu.pipeline_mode<synchronous>, transform_indices = @transform_7, window_bounds = array<i64: 1, 9>}, {pipeline_mode = #tpu.pipeline_mode<synchronous>, transform_indices = @transform_8, window_bounds = array<i64: 4, 16>}, {pipeline_mode = #tpu.pipeline_mode<synchronous>, transform_indices = @transform_9, window_bounds = array<i64: 1, 16>}, {pipeline_mode = #tpu.pipeline_mode<synchronous>, transform_indices = @transform_10, window_bounds = array<i64: 1, 16>}, {pipeline_mode = #tpu.pipeline_mode<synchronous>, transform_indices = @transform_11, window_bounds = array<i64: 8, 8>}, {pipeline_mode = #tpu.pipeline_mode<synchronous>, transform_indices = @transform_12, window_bounds = array<i64: 1, 8>}, {pipeline_mode = #tpu.pipeline_mode<synchronous>, transform_indices = @transform_13, window_bounds = array<i64: 8, 8>}, {pipeline_mode = #tpu.pipeline_mode<synchronous>, transform_indices = @transform_14, window_bounds = array<i64: 1, 8>}, {transform_indices = @transform_15, window_bounds = array<i64: 128, 9>}, {transform_indices = @transform_16, window_bounds = array<i64: 128, 24>}]} {
    %c0 = arith.constant 0 : index
    %c0_0 = arith.constant 0 : index
    %0 = vector.load %arg1[%c0, %c0_0] : memref<128x8xf32, #tpu.memory_space<vmem>>, vector<128x8xf32>
    %c0_1 = arith.constant 0 : index
    %c0_2 = arith.constant 0 : index
    %1 = vector.load %arg5[%c0_1, %c0_2] : memref<8x8xf32, #tpu.memory_space<vmem>>, vector<8x8xf32>
    %cst = arith.constant dense<0.000000e+00> : vector<128x8xf32>
    %2 = tpu.matmul %0, %1, %cst {dimension_numbers = #tpu.dot_dimension_numbers<[1], [0], [0], [1], [0, 0, 1, 1], [], []>} : vector<128x8xf32>, vector<8x8xf32>, vector<128x8xf32> -> vector<128x8xf32>
    %c0_3 = arith.constant 0 : index
    %c0_4 = arith.constant 0 : index
    %3 = vector.load %arg6[%c0_3, %c0_4] : memref<1x8xf32, #tpu.memory_space<vmem>>, vector<1x8xf32>
    %4 = vector.broadcast %3 : vector<1x8xf32> to vector<128x8xf32>
    %5 = arith.addf %2, %4 : vector<128x8xf32>
    %cst_5 = arith.constant 0.000000e+00 : f32
    %6 = vector.broadcast %cst_5 : f32 to vector<128x8xf32>
    %7 = arith.maximumf %5, %6 : vector<128x8xf32>
    %c0_6 = arith.constant 0 : index
    %c0_7 = arith.constant 0 : index
    %8 = vector.load %arg7[%c0_6, %c0_7] : memref<8x9xf32, #tpu.memory_space<vmem>>, vector<8x9xf32>
    %cst_8 = arith.constant dense<0.000000e+00> : vector<128x9xf32>
    %9 = tpu.matmul %7, %8, %cst_8 {dimension_numbers = #tpu.dot_dimension_numbers<[1], [0], [0], [1], [0, 0, 1, 1], [], []>} : vector<128x8xf32>, vector<8x9xf32>, vector<128x9xf32> -> vector<128x9xf32>
    %c0_9 = arith.constant 0 : index
    %c0_10 = arith.constant 0 : index
    %10 = vector.load %arg8[%c0_9, %c0_10] : memref<1x9xf32, #tpu.memory_space<vmem>>, vector<1x9xf32>
    %11 = vector.broadcast %10 : vector<1x9xf32> to vector<128x9xf32>
    %12 = arith.addf %9, %11 : vector<128x9xf32>
    %c0_11 = arith.constant 0 : index
    %c0_12 = arith.constant 0 : index
    %13 = vector.load %arg16[%c0_11, %c0_12] : memref<128x9xf32, #tpu.memory_space<vmem>>, vector<128x9xf32>
    tpu.vector_store %arg16[%c0_11, %c0_12], %12 {strides = array<i32>} : memref<128x9xf32, #tpu.memory_space<vmem>>, vector<128x9xf32>,
    %14 = vector.extract_strided_slice %12 {offsets = [0, 0], sizes = [128, 4], strides = [1, 1]} : vector<128x9xf32> to vector<128x4xf32>
    %15 = vector.extract_strided_slice %12 {offsets = [0, 4], sizes = [128, 4], strides = [1, 1]} : vector<128x9xf32> to vector<128x4xf32>
    %16 = vector.extract_strided_slice %12 {offsets = [0, 8], sizes = [128, 1], strides = [1, 1]} : vector<128x9xf32> to vector<128x1xf32>
    %cst_13 = arith.constant 5.000000e-01 : f32
    %17 = vector.broadcast %cst_13 : f32 to vector<128x4xf32>
    %18 = arith.mulf %17, %15 : vector<128x4xf32>
    %19 = math.exp %18 : vector<128x4xf32>
    %c0_14 = arith.constant 0 : index
    %c0_15 = arith.constant 0 : index
    %20 = vector.load %arg2[%c0_14, %c0_15] : memref<128x4xf32, #tpu.memory_space<vmem>>, vector<128x4xf32>
    %21 = arith.mulf %20, %19 : vector<128x4xf32>
    %22 = arith.addf %14, %21 : vector<128x4xf32>
    %c0_16 = arith.constant 0 : index
    %c0_17 = arith.constant 0 : index
    %23 = vector.load %arg3[%c0_16, %c0_17] : memref<128x1xf32, #tpu.memory_space<vmem>>, vector<128x1xf32>
    %cst_18 = arith.constant 9.99999993E-9 : f32
    %24 = vector.broadcast %cst_18 : f32 to vector<128x1xf32>
    %25 = arith.addf %23, %24 : vector<128x1xf32>
    %26 = math.log %25 : vector<128x1xf32>
    %cst_19 = arith.constant 0.000000e+00 : f32
    %27 = vector.broadcast %cst_19 : f32 to vector<128x1xf32>
    %28 = arith.subf %27, %26 : vector<128x1xf32>
    %cst_20 = arith.constant 9.99999993E-9 : f32
    %29 = vector.broadcast %cst_20 : f32 to vector<128x1xf32>
    %30 = arith.addf %28, %29 : vector<128x1xf32>
    %31 = math.log %30 : vector<128x1xf32>
    %cst_21 = arith.constant 0.000000e+00 : f32
    %32 = vector.broadcast %cst_21 : f32 to vector<128x1xf32>
    %33 = arith.subf %32, %31 : vector<128x1xf32>
    %34 = arith.addf %16, %33 : vector<128x1xf32>
    %35 = arith.negf %34 : vector<128x1xf32>
    %36 = math.exp %35 : vector<128x1xf32>
    %cst_22 = arith.constant 1.000000e+00 : f32
    %37 = vector.broadcast %cst_22 : f32 to vector<128x1xf32>
    %38 = arith.addf %37, %36 : vector<128x1xf32>
    %39 = arith.divf %37, %38 : vector<128x1xf32>
    %c0_23 = arith.constant 0 : index
    %c0_24 = arith.constant 0 : index
    %40 = vector.load %arg9[%c0_23, %c0_24] : memref<4x16xf32, #tpu.memory_space<vmem>>, vector<4x16xf32>
    %cst_25 = arith.constant dense<0.000000e+00> : vector<128x16xf32>
    %41 = tpu.matmul %22, %40, %cst_25 {dimension_numbers = #tpu.dot_dimension_numbers<[1], [0], [0], [1], [0, 0, 1, 1], [], []>} : vector<128x4xf32>, vector<4x16xf32>, vector<128x16xf32> -> vector<128x16xf32>
    %c0_26 = arith.constant 0 : index
    %c0_27 = arith.constant 0 : index
    %42 = vector.load %arg10[%c0_26, %c0_27] : memref<1x16xf32, #tpu.memory_space<vmem>>, vector<1x16xf32>
    %43 = vector.broadcast %39 : vector<128x1xf32> to vector<128x16xf32>
    %44 = vector.broadcast %42 : vector<1x16xf32> to vector<128x16xf32>
    %45 = arith.mulf %43, %44 : vector<128x16xf32>
    %46 = arith.addf %41, %45 : vector<128x16xf32>
    %c0_28 = arith.constant 0 : index
    %c0_29 = arith.constant 0 : index
    %47 = vector.load %arg11[%c0_28, %c0_29] : memref<1x16xf32, #tpu.memory_space<vmem>>, vector<1x16xf32>
    %48 = vector.broadcast %47 : vector<1x16xf32> to vector<128x16xf32>
    %49 = arith.addf %46, %48 : vector<128x16xf32>
    %cst_30 = arith.constant 0.000000e+00 : f32
    %50 = vector.broadcast %cst_30 : f32 to vector<128x16xf32>
    %51 = arith.maximumf %49, %50 : vector<128x16xf32>
    %52 = vector.extract_strided_slice %51 {offsets = [0, 0], sizes = [128, 8], strides = [1, 1]} : vector<128x16xf32> to vector<128x8xf32>
    %53 = vector.extract_strided_slice %51 {offsets = [0, 8], sizes = [128, 8], strides = [1, 1]} : vector<128x16xf32> to vector<128x8xf32>
    %c0_31 = arith.constant 0 : index
    %c0_32 = arith.constant 0 : index
    %54 = vector.load %arg12[%c0_31, %c0_32] : memref<8x8xf32, #tpu.memory_space<vmem>>, vector<8x8xf32>
    %cst_33 = arith.constant dense<0.000000e+00> : vector<128x8xf32>
    %55 = tpu.matmul %52, %54, %cst_33 {dimension_numbers = #tpu.dot_dimension_numbers<[1], [0], [0], [1], [0, 0, 1, 1], [], []>} : vector<128x8xf32>, vector<8x8xf32>, vector<128x8xf32> -> vector<128x8xf32>
    %c0_34 = arith.constant 0 : index
    %c0_35 = arith.constant 0 : index
    %56 = vector.load %arg13[%c0_34, %c0_35] : memref<1x8xf32, #tpu.memory_space<vmem>>, vector<1x8xf32>
    %57 = vector.broadcast %56 : vector<1x8xf32> to vector<128x8xf32>
    %58 = arith.addf %55, %57 : vector<128x8xf32>
    %59 = arith.negf %58 : vector<128x8xf32>
    %60 = math.exp %59 : vector<128x8xf32>
    %cst_36 = arith.constant 1.000000e+00 : f32
    %61 = vector.broadcast %cst_36 : f32 to vector<128x8xf32>
    %62 = arith.addf %61, %60 : vector<128x8xf32>
    %63 = arith.divf %61, %62 : vector<128x8xf32>
    %c0_37 = arith.constant 0 : index
    %c0_38 = arith.constant 0 : index
    %64 = vector.load %arg14[%c0_37, %c0_38] : memref<8x8xf32, #tpu.memory_space<vmem>>, vector<8x8xf32>
    %cst_39 = arith.constant dense<0.000000e+00> : vector<128x8xf32>
    %65 = tpu.matmul %53, %64, %cst_39 {dimension_numbers = #tpu.dot_dimension_numbers<[1], [0], [0], [1], [0, 0, 1, 1], [], []>} : vector<128x8xf32>, vector<8x8xf32>, vector<128x8xf32> -> vector<128x8xf32>
    %c0_40 = arith.constant 0 : index
    %c0_41 = arith.constant 0 : index
    %66 = vector.load %arg15[%c0_40, %c0_41] : memref<1x8xf32, #tpu.memory_space<vmem>>, vector<1x8xf32>
    %67 = vector.broadcast %66 : vector<1x8xf32> to vector<128x8xf32>
    %68 = arith.addf %65, %67 : vector<128x8xf32>
    %69 = arith.negf %68 : vector<128x8xf32>
    %70 = math.exp %69 : vector<128x8xf32>
    %cst_42 = arith.constant 1.000000e+00 : f32
    %71 = vector.broadcast %cst_42 : f32 to vector<128x8xf32>
    %72 = arith.addf %71, %70 : vector<128x8xf32>
    %73 = arith.divf %71, %72 : vector<128x8xf32>
    %c0_43 = arith.constant 0 : index
    %c0_44 = arith.constant 0 : index
    %74 = vector.load %arg4[%c0_43, %c0_44] : memref<1x8xf32, #tpu.memory_space<vmem>>, vector<1x8xf32>
    %cst_45 = arith.constant 1.000000e+00 : f32
    %75 = vector.broadcast %cst_45 : f32 to vector<1x8xf32>
    %76 = arith.subf %75, %74 : vector<1x8xf32>
    %77 = vector.broadcast %76 : vector<1x8xf32> to vector<128x8xf32>
    %78 = vector.broadcast %39 : vector<128x1xf32> to vector<128x8xf32>
    %79 = arith.subf %77, %78 : vector<128x8xf32>
    %cst_46 = arith.constant 2.000000e+00 : f32
    %80 = vector.broadcast %cst_46 : f32 to vector<1x8xf32>
    %81 = arith.mulf %80, %74 : vector<1x8xf32>
    %82 = vector.broadcast %81 : vector<1x8xf32> to vector<128x8xf32>
    %83 = vector.broadcast %39 : vector<128x1xf32> to vector<128x8xf32>
    %84 = arith.mulf %82, %83 : vector<128x8xf32>
    %85 = arith.addf %79, %84 : vector<128x8xf32>
    %86 = arith.subf %63, %73 : vector<128x8xf32>
    %87 = arith.mulf %85, %86 : vector<128x8xf32>
    %88 = arith.addf %73, %87 : vector<128x8xf32>
    %cst_47 = arith.constant 9.99999993E-9 : f32
    %cst_48 = arith.constant 1.000000e+00 : f32
    %89 = vector.broadcast %cst_47 : f32 to vector<128x8xf32>
    %90 = arith.maximumf %89, %88 : vector<128x8xf32>
    %91 = vector.broadcast %cst_48 : f32 to vector<128x8xf32>
    %92 = arith.minimumf %91, %90 : vector<128x8xf32>
    %c0_49 = arith.constant 0 : index
    %c0_50 = arith.constant 0 : index
    %93 = vector.load %arg17[%c0_49, %c0_50] : memref<128x24xf32, #tpu.memory_space<vmem>>, vector<128x8xf32>
    tpu.vector_store %arg17[%c0_49, %c0_50], %92 {strides = array<i32>} : memref<128x24xf32, #tpu.memory_space<vmem>>, vector<128x8xf32>,
    %c0_51 = arith.constant 0 : index
    %c8 = arith.constant 8 : index
    %94 = vector.load %arg17[%c0_51, %c8] : memref<128x24xf32, #tpu.memory_space<vmem>>, vector<128x8xf32>
    tpu.vector_store %arg17[%c0_51, %c8], %63 {strides = array<i32>} : memref<128x24xf32, #tpu.memory_space<vmem>>, vector<128x8xf32>,
    %c0_52 = arith.constant 0 : index
    %c16 = arith.constant 16 : index
    %95 = vector.load %arg17[%c0_52, %c16] : memref<128x24xf32, #tpu.memory_space<vmem>>, vector<128x8xf32>
    tpu.vector_store %arg17[%c0_52, %c16], %73 {strides = array<i32>} : memref<128x24xf32, #tpu.memory_space<vmem>>, vector<128x8xf32>,
    return
  }
  func.func @transform_0(%arg0: i32) -> (i32, i32) {
    %c0_i32 = arith.constant 0 : i32
    %c0_i32_0 = arith.constant 0 : i32
    return %arg0, %c0_i32 : i32, i32
  }
  func.func @transform_1(%arg0: i32) -> (i32, i32) {
    %c0_i32 = arith.constant 0 : i32
    %c0_i32_0 = arith.constant 0 : i32
    return %arg0, %c0_i32 : i32, i32
  }
  func.func @transform_2(%arg0: i32) -> (i32, i32) {
    %c0_i32 = arith.constant 0 : i32
    %c0_i32_0 = arith.constant 0 : i32
    return %arg0, %c0_i32 : i32, i32
  }
  func.func @transform_3(%arg0: i32) -> (i32, i32) {
    %c0_i32 = arith.constant 0 : i32
    %c0_i32_0 = arith.constant 0 : i32
    %c0_i32_1 = arith.constant 0 : i32
    return %c0_i32, %c0_i32_0 : i32, i32
  }
  func.func @transform_4(%arg0: i32) -> (i32, i32) {
    %c0_i32 = arith.constant 0 : i32
    %c0_i32_0 = arith.constant 0 : i32
    %c0_i32_1 = arith.constant 0 : i32
    return %c0_i32, %c0_i32_0 : i32, i32
  }
  func.func @transform_5(%arg0: i32) -> (i32, i32) {
    %c0_i32 = arith.constant 0 : i32
    %c0_i32_0 = arith.constant 0 : i32
    %c0_i32_1 = arith.constant 0 : i32
    return %c0_i32, %c0_i32_0 : i32, i32
  }
  func.func @transform_6(%arg0: i32) -> (i32, i32) {
    %c0_i32 = arith.constant 0 : i32
    %c0_i32_0 = arith.constant 0 : i32
    %c0_i32_1 = arith.constant 0 : i32
    return %c0_i32, %c0_i32_0 : i32, i32
  }
  func.func @transform_7(%arg0: i32) -> (i32, i32) {
    %c0_i32 = arith.constant 0 : i32
    %c0_i32_0 = arith.constant 0 : i32
    %c0_i32_1 = arith.constant 0 : i32
    return %c0_i32, %c0_i32_0 : i32, i32
  }
  func.func @transform_8(%arg0: i32) -> (i32, i32) {
    %c0_i32 = arith.constant 0 : i32
    %c0_i32_0 = arith.constant 0 : i32
    %c0_i32_1 = arith.constant 0 : i32
    return %c0_i32, %c0_i32_0 : i32, i32
  }
  func.func @transform_9(%arg0: i32) -> (i32, i32) {
    %c0_i32 = arith.constant 0 : i32
    %c0_i32_0 = arith.constant 0 : i32
    %c0_i32_1 = arith.constant 0 : i32
    return %c0_i32, %c0_i32_0 : i32, i32
  }
  func.func @transform_10(%arg0: i32) -> (i32, i32) {
    %c0_i32 = arith.constant 0 : i32
    %c0_i32_0 = arith.constant 0 : i32
    %c0_i32_1 = arith.constant 0 : i32
    return %c0_i32, %c0_i32_0 : i32, i32
  }
  func.func @transform_11(%arg0: i32) -> (i32, i32) {
    %c0_i32 = arith.constant 0 : i32
    %c0_i32_0 = arith.constant 0 : i32
    %c0_i32_1 = arith.constant 0 : i32
    return %c0_i32, %c0_i32_0 : i32, i32
  }
  func.func @transform_12(%arg0: i32) -> (i32, i32) {
    %c0_i32 = arith.constant 0 : i32
    %c0_i32_0 = arith.constant 0 : i32
    %c0_i32_1 = arith.constant 0 : i32
    return %c0_i32, %c0_i32_0 : i32, i32
  }
  func.func @transform_13(%arg0: i32) -> (i32, i32) {
    %c0_i32 = arith.constant 0 : i32
    %c0_i32_0 = arith.constant 0 : i32
    %c0_i32_1 = arith.constant 0 : i32
    return %c0_i32, %c0_i32_0 : i32, i32
  }
  func.func @transform_14(%arg0: i32) -> (i32, i32) {
    %c0_i32 = arith.constant 0 : i32
    %c0_i32_0 = arith.constant 0 : i32
    %c0_i32_1 = arith.constant 0 : i32
    return %c0_i32, %c0_i32_0 : i32, i32
  }
  func.func @transform_15(%arg0: i32) -> (i32, i32) {
    %c0_i32 = arith.constant 0 : i32
    %c0_i32_0 = arith.constant 0 : i32
    return %arg0, %c0_i32 : i32, i32
  }
  func.func @transform_16(%arg0: i32) -> (i32, i32) {
    %c0_i32 = arith.constant 0 : i32
    %c0_i32_0 = arith.constant 0 : i32
    return %arg0, %c0_i32 : i32, i32
  }
}

</mosaic_0001>

<bundles_post_ra>
// kernel: tpu_custom_call.1
= control target key start
LH: loop header
LB: loop body
LE: loop exit
PB: predicated region body
PF: predicated region fallthrough
CT: control target
= control target key end

     0   :  { %s3671_s21 = smov 0   ;;  %s4515_s0 = inlined_call_operand.vmem [shape: f32[512,8], index: 0, kind: input, shape index: {}]   ;;  %s4516_s1 = inlined_call_operand.vmem [shape: f32[512,4], index: 1, kind: input, shape index: {}]   ;;  %s4517_s2 = inlined_call_operand.vmem [shape: f32[512,1], index: 2, kind: input, shape index: {}]   ;;  %s4518_s3 = inlined_call_operand.vmem [shape: f32[1,8], index: 3, kind: input, shape index: {}]   ;;  %s4519_s4 = inlined_call_operand.vmem [shape: f32[8,8], index: 4, kind: input, shape index: {}]   ;;  %s4520_s5 = inlined_call_operand.vmem [shape: f32[1,8], index: 5, kind: input, shape index: {}]   ;;  %s4521_s6 = inlined_call_operand.vmem [shape: f32[8,9], index: 6, kind: input, shape index: {}]   ;;  %s4522_s7 = inlined_call_operand.vmem [shape: f32[1,9], index: 7, kind: input, shape index: {}]   ;;  %s4523_s8 = inlined_call_operand.vmem [shape: f32[4,16], index: 8, kind: input, shape index: {}]   ;;  %s4524_s9 = inlined_call_operand.vmem [shape: f32[1,16], index: 9, kind: input, shape index: {}]   ;;  %s4525_s10 = inlined_call_operand.vmem [shape: f32[1,16], index: 10, kind: input, shape index: {}]   ;;  %s4526_s11 = inlined_call_operand.vmem [shape: f32[8,8], index: 11, kind: input, shape index: {}]   ;;  %s4527_s12 = inlined_call_operand.vmem [shape: f32[1,8], index: 12, kind: input, shape index: {}]   ;;  %s4528_s13 = inlined_call_operand.vmem [shape: f32[8,8], index: 13, kind: input, shape index: {}]   ;;  %s4529_s14 = inlined_call_operand.vmem [shape: f32[1,8], index: 14, kind: input, shape index: {}]   ;;  %s4530_s15 = inlined_call_operand.vmem [shape: f32[512,9], index: 15, kind: output, shape index: {0}]   ;;  %s4531_s16 = inlined_call_operand.vmem [shape: f32[512,24], index: 16, kind: output, shape index: {1}]  }
   0x1   :  { %4532 = sst [smem:[#allocation2_spill]] %s4515_s0 }
   0x2 LB: > { %s2901_s22 = sadd.s32 4294967295, %s3579_s21   ;;  %p2905_p0 = scmp.ge.s32.totalorder %s3579_s21, 1  ;;  %s3579_s21 = sphi %s3671_s21, %s27_s21  }
   0x3   : > { %p488_p1 = scmp.lt.s32.totalorder %s3579_s21, 5 }
   0x5   : > { %p489_p2 = pnand %p2905_p0, %p488_p1 }
   0x6   : > { %v599_v0 = vld [vmem:[%s4519_s4] sm:$0xff] (!%p489_p2)  ;;  %s2906_s25 = sshll.u32 (!%p489_p2), %s2901_s22, 4  ;;  %vm607_vm0 = vcmask (!%p489_p2), 64512   ;;  %s4533_s0 = sld [smem:[#allocation2_spill]] (!%p489_p2)  ;;  %vm1668_vm1 = vcmask (!%p489_p2), 1043456   ;;  %vm1018_vm2 = vcmask (!%p489_p2), 72704  }
   0x7   : > { %492 = sbr.rel (%p489_p2) target bundleno = 1313 (0x521), region = 80  ;;  %v817_v1 = vld [vmem:[%s4521_s6] sm:$0xff] (!%p489_p2)  ;;  %3138 = vmatprep.subr.mxu0 (!%p489_p2), %v599_v0  ;;  %p554_p3 = scmp.lt.s32.totalorder (!%p489_p2), %s2906_s25, 63  ;;  %3268 = vmatprep.subr.mxu1 (!%p489_p2), %v599_v0  ;;  %vm1619_vm3 = vcmask (!%p489_p2), 31744   ;;  %vm2689_vm4 = vcmask (!%p489_p2), 130112   ;;  %vm2770_vm5 = vcmask (!%p489_p2), 195712  }
   0x8   : > { %3139 = vmatpush3.msra.mxu0 (!%p489_p2), %v599_v0  ;;  %3269 = vmatpush3.msra.mxu1 (!%p489_p2), %v599_v0  ;;  %v2916_v18 = vld [vmem:[%s4520_s5] ss:$0 sm:$0xff] (!%p489_p2)  ;;  %s3582_s18 = smov (!%p489_p2), 8  }
   0x9   : > { %3164 = vmatprep.subr.mxu1 (!%p489_p2), %v817_v1 }
   0xe   : > { %s4535_s25 = smov (!%p554_p3, %s2906_s25), 63 }
   0xf   : > { %s3685_s28 = sshll.u32 %s4535_s25, 3 }
  0x10   : > { %s3691_s17 = scalar_lea.vmem %s4533_s0, %s3685_s28  ;;  %s3751_s25 = scalar_lea.vmem %s4517_s2, %s3685_s28 }
  0x11   : > { %v583_v2 = vld [vmem:[%s3691_s17] sm:$0xff]  ;;  %v584_v3 = vld [vmem:[%s3691_s17 + $0x8] sm:$0xff]  ;;  %v585_v4 = vld [vmem:[%s3691_s17 + $0x10] sm:$0xff]  ;;  %s3767_s0 = scalar_lea.vmem %s4530_s15, %s3685_s28  ;;  %s3946_s22 = scalar_lea.vmem %s4516_s1, %s3685_s28 }
  0x12   : > { %3140 = vmatprep.mubr.msk.f32.mxu0 %vm607_vm0, %v583_v2  ;;  %v591_v5 = vld [vmem:[%s3691_s17 + $0x40] sm:$0xff]  ;;  %v586_v6 = vld [vmem:[%s3691_s17 + $0x18] sm:$0xff]  ;;  %v592_v7 = vld [vmem:[%s3691_s17 + $0x48] sm:$0xff]  ;;  %s4349_s29 = scalar_lea.vmem %s4531_s16, %s3685_s28 }
  0x13   : > { %3141 = vmatmul.mubr.msk.f32.vlgmr.msra.gmra.mrb[0].mxu0 %vm607_vm0, %v584_v3  ;;  %3152 = vmatprep.mubr.msk.f32.mxu1 %vm607_vm0, %v591_v5  ;;  %v593_v8 = vld [vmem:[%s3691_s17 + $0x50] sm:$0xff]  ;;  %v587_v9 = vld [vmem:[%s3691_s17 + $0x20] sm:$0xff]  ;;  %v594_v10 = vld [vmem:[%s3691_s17 + $0x58] sm:$0xff] }
  0x14   : > { %3143 = vmatprep.mubr.msk.f32.mxu0 %vm607_vm0, %v585_v4  ;;  %3153 = vmatmul.mubr.msk.f32.vlgmr.msra.gmra.mrb[0].mxu1 %vm607_vm0, %v592_v7  ;;  %v595_v11 = vld [vmem:[%s3691_s17 + $0x60] sm:$0xff]  ;;  %v588_v12 = vld [vmem:[%s3691_s17 + $0x28] sm:$0xff]  ;;  %v589_v13 = vld [vmem:[%s3691_s17 + $0x30] sm:$0xff] }
  0x15   : > { %3155 = vmatprep.mubr.msk.f32.mxu1 %vm607_vm0, %v593_v8  ;;  %3165 = vmatpush3.msra.mxu1 %v817_v1  ;;  %v596_v14 = vld [vmem:[%s3691_s17 + $0x68] sm:$0xff]  ;;  %v597_v15 = vld [vmem:[%s3691_s17 + $0x70] sm:$0xff]  ;;  %v590_v16 = vld [vmem:[%s3691_s17 + $0x38] sm:$0xff] }
  0x16   : > { %v598_v17 = vld [vmem:[%s3691_s17 + $0x78] sm:$0xff]  ;;  %v1515_v3 = vld [vmem:[%s4523_s8] sm:$0xf]  ;;  %v1197_v7 = vld [vmem:[%s3751_s25 + $0x10] sm:$0xff]  ;;  %s3581_s17 = smov 124  }
  0x17   : > { %3144 = vmatmul.mubr.msk.f32.gmra.mrb[2].mxu0 %vm607_vm0, %v586_v6  ;;  %3190 = vmatprep.subr.msk.mxu0 %vm1668_vm1, %v1515_v3  ;;  %v1195_v4 = vld [vmem:[%s3751_s25] sm:$0xff]  ;;  %v1196_v6 = vld [vmem:[%s3751_s25 + $0x8] sm:$0xff] }
  0x18   : > { %3146 = vmatprep.mubr.msk.f32.mxu0 %vm607_vm0, %v587_v9  ;;  %3156 = vmatmul.mubr.msk.f32.gmra.mrb[2].mxu1 %vm607_vm0, %v594_v10  ;;  %v1211_v5 = vadd.f32 1e-08, %v1195_v4  ;;  %v1212_v8 = vadd.f32 1e-08, %v1196_v6  ;;  %v1213_v9 = vadd.f32 1e-08, %v1197_v7 }
  0x19   : > { %3158 = vmatprep.mubr.msk.f32.mxu1 %vm607_vm0, %v595_v11  ;;  %3191 = vmatpush3.msk.msra.mxu0 %vm1668_vm1, %v1515_v3  ;;  %v3759_v11 = vld [vmem:[%s4522_s7] ss:$0 sm:$0xff] }
  0x1a   : > { %3285 = vlog2.f32 %v1211_v5 }
  0x1b   : > { %3147 = vmatmul.mubr.msk.f32.gmra.mrb[4].mxu0 %vm607_vm0, %v588_v12  ;;  %3287 = vlog2.f32 %v1212_v8  ;;  %v1198_v12 = vld [vmem:[%s3751_s25 + $0x18] sm:$0xff] }
  0x1c   : > { %3149 = vmatprep.mubr.msk.f32.mxu0 %vm607_vm0, %v589_v13  ;;  %3159 = vmatmul.mubr.msk.f32.gmra.mrb[4].mxu1 %vm607_vm0, %v596_v14  ;;  %3289 = vlog2.f32 %v1213_v9  ;;  %v1199_v13 = vld [vmem:[%s3751_s25 + $0x20] sm:$0xff] }
  0x1d   : > { %3161 = vmatprep.mubr.msk.f32.mxu1 %vm607_vm0, %v597_v15  ;;  %v1200_v15 = vld [vmem:[%s3751_s25 + $0x28] sm:$0xff] }
  0x1f   : > { %3150 = vmatmul.mubr.msk.f32.gmra.mrb[6].mxu0 %vm607_vm0, %v590_v16 }
  0x20   : > { %3162 = vmatmul.mubr.msk.f32.gmra.mrb[6].mxu1 %vm607_vm0, %v598_v17 }
  0x24   : > { %v3286_v10 = vpop.eup %3285 }
  0xe6   : > { %v3142_v19 = vpop.f32.mrb[0].mxu0 }
  0xe7   : > { %v728_v20 = vadd.f32 %v3142_v19, %v2916_v18  ;;  %v722_v21 = vpop.f32.mrb[1].mxu0  ;;  %v3154_v23 = vpop.f32.mrb[0].mxu1  ;;  %v1214_v19 = vadd.f32 1e-08, %v1198_v12 }
  0xe8   : > { %v723_v22 = vadd.f32 %v2916_v18, %v722_v21  ;;  %v762_v24 = vpop.f32.mrb[1].mxu1  ;;  %v768_v50 = vadd.f32 %v3154_v23, %v2916_v18  ;;  %v1215_v21 = vadd.f32 1e-08, %v1199_v13  ;;  %v1205_v13 = vld [vmem:[%s3751_s25 + $0x50] sm:$0xff] }
  0xe9   : > { %v802_v27 = vmax.f32 %v728_v20, 0.0  ;;  %v763_v44 = vadd.f32 %v2916_v18, %v762_v24  ;;  %v1216_v24 = vadd.f32 1e-08, %v1200_v15  ;;  %3291 = vlog2.f32 %v1214_v19 }
  0xea   : > { %v801_v25 = vmax.f32 %v723_v22, 0.0  ;;  %v3145_v26 = vpop.f32.mrb[2].mxu0  ;;  %v810_v55 = vmax.f32 %v768_v50, 0.0  ;;  %v1201_v22 = vld [vmem:[%s3751_s25 + $0x30] sm:$0xff]  ;;  %3293 = vlog2.f32 %v1215_v21 }
  0xeb   : > { %v738_v28 = vadd.f32 %v3145_v26, %v2916_v18  ;;  %v732_v29 = vpop.f32.mrb[3].mxu0  ;;  %v3157_v31 = vpop.f32.mrb[2].mxu1  ;;  %v809_v53 = vmax.f32 %v763_v44, 0.0  ;;  %3295 = vlog2.f32 %v1216_v24 }
  0xec   : > { %v733_v30 = vadd.f32 %v2916_v18, %v732_v29  ;;  %3166 = vmatprep.mubr.msk.f32.mxu1 %vm607_vm0, %v801_v25  ;;  %v772_v32 = vpop.f32.mrb[3].mxu1  ;;  %v778_v56 = vadd.f32 %v3157_v31, %v2916_v18  ;;  %v1202_v25 = vld [vmem:[%s3751_s25 + $0x38] sm:$0xff]  ;;  %v1217_v31 = vadd.f32 1e-08, %v1201_v22 }
  0xed   : > { %3167 = vmatmul.mubr.msk.f32.vlgmr.msra.gmra.mrb[8].mxu1 %vm607_vm0, %v802_v27  ;;  %v804_v35 = vmax.f32 %v738_v28, 0.0  ;;  %v773_v54 = vadd.f32 %v2916_v18, %v772_v32  ;;  %v3288_v32 = vpop.eup %3287 }
  0xee   : > { %v803_v33 = vmax.f32 %v733_v30, 0.0  ;;  %v3148_v34 = vpop.f32.mrb[4].mxu0  ;;  %v812_v59 = vmax.f32 %v778_v56, 0.0  ;;  %v1230_v44 = vmul.f32 0.6931472, %v3288_v32 }
  0xef   : > { %v748_v36 = vadd.f32 %v3148_v34, %v2916_v18  ;;  %v742_v37 = vpop.f32.mrb[5].mxu0  ;;  %v3160_v39 = vpop.f32.mrb[4].mxu1  ;;  %v811_v57 = vmax.f32 %v773_v54, 0.0 }
  0xf0   : > { %v743_v38 = vadd.f32 %v2916_v18, %v742_v37  ;;  %3169 = vmatprep.mubr.msk.f32.mxu1 %vm607_vm0, %v803_v33  ;;  %v782_v41 = vpop.f32.mrb[5].mxu1  ;;  %v788_v60 = vadd.f32 %v3160_v39, %v2916_v18  ;;  %v1260_v56 = vsub.f32 0.0, %v1230_v44 }
  0xf1   : > { %v806_v40 = vmax.f32 %v748_v36, 0.0  ;;  %3170 = vmatmul.mubr.msk.f32.gmra.mrb[10].mxu1 %vm607_vm0, %v804_v35  ;;  %v783_v58 = vadd.f32 %v2916_v18, %v782_v41  ;;  %v1218_v35 = vadd.f32 1e-08, %v1202_v25  ;;  %v3290_v36 = vpop.eup %3289 }
  0xf2   : > { %v805_v42 = vmax.f32 %v743_v38, 0.0  ;;  %v3151_v43 = vpop.f32.mrb[6].mxu0  ;;  %v814_v63 = vmax.f32 %v788_v60, 0.0  ;;  %v1276_v7 = vadd.f32 1e-08, %v1260_v56 }
  0xf3   : > { %v758_v45 = vadd.f32 %v3151_v43, %v2916_v18  ;;  %v752_v46 = vpop.f32.mrb[7].mxu0  ;;  %v3163_v48 = vpop.f32.mrb[6].mxu1  ;;  %v813_v61 = vmax.f32 %v783_v58, 0.0 }
  0xf4   : > { %v753_v47 = vadd.f32 %v2916_v18, %v752_v46  ;;  %3172 = vmatprep.mubr.msk.f32.mxu1 %vm607_vm0, %v805_v42  ;;  %v792_v51 = vpop.f32.mrb[7].mxu1  ;;  %v798_v0 = vadd.f32 %v3163_v48, %v2916_v18  ;;  %v1203_v48 = vld [vmem:[%s3751_s25 + $0x40] sm:$0xff] }
  0xf5   : > { %v808_v49 = vmax.f32 %v758_v45, 0.0  ;;  %3173 = vmatmul.mubr.msk.f32.gmra.mrb[12].mxu1 %vm607_vm0, %v806_v40  ;;  %v793_v62 = vadd.f32 %v2916_v18, %v792_v51  ;;  %v1228_v18 = vmul.f32 0.6931472, %v3286_v10  ;;  %v1204_v51 = vld [vmem:[%s3751_s25 + $0x48] sm:$0xff] }
  0xf6   : > { %v807_v52 = vmax.f32 %v753_v47, 0.0  ;;  %v816_v2 = vmax.f32 %v798_v0, 0.0  ;;  %v1232_v47 = vmul.f32 0.6931472, %v3290_v36 }
  0xf7   : > { %v815_v1 = vmax.f32 %v793_v62, 0.0  ;;  %v1259_v30 = vsub.f32 0.0, %v1228_v18  ;;  %v3292_v62 = vpop.eup %3291  ;;  %v1206_v18 = vld [vmem:[%s3751_s25 + $0x58] sm:$0xff] }
  0xf8   : > { %3175 = vmatprep.mubr.msk.f32.mxu1 %vm607_vm0, %v807_v52  ;;  %v1261_v60 = vsub.f32 0.0, %v1232_v47  ;;  %v1222_v32 = vadd.f32 1e-08, %v1206_v18 }
  0xf9   : > { %3176 = vmatmul.mubr.msk.f32.gmra.mrb[14].mxu1 %vm607_vm0, %v808_v49  ;;  %v1275_v43 = vadd.f32 1e-08, %v1259_v30 }
  0xfa   : > { %3178 = vmatprep.mubr.msk.f32.mxu1 %vm607_vm0, %v809_v53  ;;  %v1277_v12 = vadd.f32 1e-08, %v1261_v60 }
  0xfd   : > { %3179 = vmatmul.mubr.msk.f32.gmra.mrb[16].mxu1 %vm607_vm0, %v810_v55 }
  0xfe   : > { %3181 = vmatprep.mubr.msk.f32.mxu1 %vm607_vm0, %v811_v57  ;;  %v1219_v57 = vadd.f32 1e-08, %v1203_v48 }
 0x101   : > { %3182 = vmatmul.mubr.msk.f32.gmra.mrb[18].mxu1 %vm607_vm0, %v812_v59 }
 0x102   : > { %3184 = vmatprep.mubr.msk.f32.mxu1 %vm607_vm0, %v813_v61  ;;  %v1220_v61 = vadd.f32 1e-08, %v1204_v51 }
 0x105   : > { %3185 = vmatmul.mubr.msk.f32.gmra.mrb[20].mxu1 %vm607_vm0, %v814_v63 }
 0x106   : > { %3187 = vmatprep.mubr.msk.f32.mxu1 %vm607_vm0, %v815_v1  ;;  %v3294_v1 = vpop.eup %3293 }
 0x107   : > { %v3830_v4 = vpop.eup %3295 }
 0x109   : > { %3188 = vmatmul.mubr.msk.f32.gmra.mrb[22].mxu1 %vm607_vm0, %v816_v2 }
 0x1c0   : > { %v3168_v14 = vpop.f32.mrb[8].mxu1 }
 0x1c1   : > { %v3771_v16 = vadd.f32 %v3168_v14, %v3759_v11  ;;  %v939_v17 = vpop.f32.mrb[9].mxu1 }
 0x1c2   : > { %v3774_v20 = vadd.f32 %v3759_v11, %v939_v17 }
 0x1c3   : > { %1020 = vst.msk [vmem:[%s3767_s0 + $0x8] sm:$0xff] %vm1018_vm2, %v3771_v16  ;;  %v1036_v23 = vmul.f32 0.5, %v3771_v16 }
 0x1c4   : > { %1019 = vst.msk [vmem:[%s3767_s0] sm:$0xff] %vm1018_vm2, %v3774_v20  ;;  %v1035_v26 = vmul.f32 0.5, %v3774_v20  ;;  %v3171_v27 = vpop.f32.mrb[10].mxu1 }
 0x1c5   : > { %v3787_v28 = vadd.f32 %v3171_v27, %v3759_v11  ;;  %v949_v29 = vpop.f32.mrb[11].mxu1  ;;  %v1053_v37 = vmul.f32 1.442695, %v1036_v23  ;;  %v1234_v23 = vmul.f32 0.6931472, %v3292_v62 }
 0x1c6   : > { %v1051_v33 = vmul.f32 1.442695, %v1035_v26  ;;  %v3790_v34 = vadd.f32 %v3759_v11, %v949_v29  ;;  %v1221_v27 = vadd.f32 1e-08, %v1205_v13  ;;  %v1210_v13 = vld [vmem:[%s3751_s25 + $0x78] sm:$0xff] }
 0x1c7   : > { %1022 = vst.msk [vmem:[%s3767_s0 + $0x18] sm:$0xff] %vm1018_vm2, %v3787_v28  ;;  %v1038_v38 = vmul.f32 0.5, %v3787_v28 }
 0x1c8   : > { %3297 = vpow2.f32 %v1051_v33  ;;  %1021 = vst.msk [vmem:[%s3767_s0 + $0x10] sm:$0xff] %vm1018_vm2, %v3790_v34  ;;  %v1037_v39 = vmul.f32 0.5, %v3790_v34  ;;  %v3174_v40 = vpop.f32.mrb[12].mxu1  ;;  %v1207_v33 = vld [vmem:[%s3751_s25 + $0x60] sm:$0xff] }
 0x1c9   : > { %v3801_v41 = vadd.f32 %v3174_v40, %v3759_v11  ;;  %v959_v42 = vpop.f32.mrb[13].mxu1  ;;  %3299 = vlog2.f32 %v1217_v31  ;;  %v1057_v49 = vmul.f32 1.442695, %v1038_v38  ;;  %v1208_v38 = vld [vmem:[%s3751_s25 + $0x68] sm:$0xff]  ;;  %v1223_v48 = vadd.f32 1e-08, %v1207_v33 }
 0x1ca   : > { %v1055_v45 = vmul.f32 1.442695, %v1037_v39  ;;  %v3804_v46 = vadd.f32 %v3759_v11, %v959_v42  ;;  %3301 = vlog2.f32 %v1218_v35  ;;  %v1262_v42 = vsub.f32 0.0, %v1234_v23 }
 0x1cb   : > { %3303 = vpow2.f32 %v1053_v37  ;;  %1024 = vst.msk [vmem:[%s3767_s0 + $0x28] sm:$0xff] %vm1018_vm2, %v3801_v41  ;;  %v1040_v50 = vmul.f32 0.5, %v3801_v41 }
 0x1cc   : > { %3305 = vpow2.f32 %v1055_v45  ;;  %1023 = vst.msk [vmem:[%s3767_s0 + $0x20] sm:$0xff] %vm1018_vm2, %v3804_v46  ;;  %v1039_v52 = vmul.f32 0.5, %v3804_v46  ;;  %v3177_v53 = vpop.f32.mrb[14].mxu1  ;;  %v1278_v62 = vadd.f32 1e-08, %v1262_v42 }
 0x1cd   : > { %v3817_v54 = vadd.f32 %v3177_v53, %v3759_v11  ;;  %v969_v55 = vpop.f32.mrb[15].mxu1  ;;  %3307 = vlog2.f32 %v1275_v43  ;;  %v1061_v63 = vmul.f32 1.442695, %v1040_v50  ;;  %v1236_v43 = vmul.f32 0.6931472, %v3294_v1  ;;  %v1209_v53 = vld [vmem:[%s3751_s25 + $0x70] sm:$0xff] }
 0x1ce   : > { %v1059_v58 = vmul.f32 1.442695, %v1039_v52  ;;  %v3820_v59 = vadd.f32 %v3759_v11, %v969_v55  ;;  %3309 = vpow2.f32 %v1057_v49  ;;  %v1224_v52 = vadd.f32 1e-08, %v1208_v38 }
 0x1cf   : > { %1026 = vst.msk [vmem:[%s3767_s0 + $0x38] sm:$0xff] %vm1018_vm2, %v3817_v54  ;;  %v1042_v0 = vmul.f32 0.5, %v3817_v54 }
 0x1d0   : > { %3311 = vpow2.f32 %v1059_v58  ;;  %1025 = vst.msk [vmem:[%s3767_s0 + $0x30] sm:$0xff] %vm1018_vm2, %v3820_v59  ;;  %v1041_v2 = vmul.f32 0.5, %v3820_v59  ;;  %v3180_v3 = vpop.f32.mrb[16].mxu1 }
 0x1d1   : > { %v3833_v5 = vadd.f32 %v3180_v3, %v3759_v11  ;;  %v979_v6 = vpop.f32.mrb[17].mxu1  ;;  %3313 = vlog2.f32 %v1219_v57  ;;  %v1065_v15 = vmul.f32 1.442695, %v1042_v0  ;;  %v1238_v3 = vmul.f32 0.6931472, %v3830_v4 }
 0x1d2   : > { %v3298_v8 = vpop.eup %3297  ;;  %v1063_v9 = vmul.f32 1.442695, %v1041_v2  ;;  %v3836_v10 = vadd.f32 %v3759_v11, %v979_v6  ;;  %3315 = vlog2.f32 %v1220_v61  ;;  %v1225_v6 = vadd.f32 1e-08, %v1209_v53 }
 0x1d3   : > { %v3839_v14 = vpop.eup %3299  ;;  %3317 = vpow2.f32 %v1061_v63  ;;  %1028 = vst.msk [vmem:[%s3767_s0 + $0x48] sm:$0xff] %vm1018_vm2, %v3833_v5  ;;  %v1044_v17 = vmul.f32 0.5, %v3833_v5  ;;  %1115 = vrot.lane.b32.xlu0 %v3298_v8, %s3581_s17  ;;  %v1263_v63 = vsub.f32 0.0, %v1236_v43 }
 0x1d4   : > { %v3847_v19 = vpop.eup %3301  ;;  %3319 = vpow2.f32 %v1063_v9  ;;  %1027 = vst.msk [vmem:[%s3767_s0 + $0x40] sm:$0xff] %vm1018_vm2, %v3836_v10  ;;  %v1043_v21 = vmul.f32 0.5, %v3836_v10  ;;  %v3183_v22 = vpop.f32.mrb[18].mxu1 }
 0x1d5   : > { %v3304_v24 = vpop.eup %3303  ;;  %v3854_v25 = vadd.f32 %v3183_v22, %v3759_v11  ;;  %v989_v26 = vpop.f32.mrb[19].mxu1  ;;  %3321 = vlog2.f32 %v1276_v7  ;;  %v1069_v36 = vmul.f32 1.442695, %v1044_v17  ;;  %v1279_v18 = vadd.f32 1e-08, %v1263_v63 }
 0x1d6   : > { %v3306_v29 = vpop.eup %3305  ;;  %v1067_v30 = vmul.f32 1.442695, %v1043_v21  ;;  %v3857_v31 = vadd.f32 %v3759_v11, %v989_v26  ;;  %3323 = vlog2.f32 %v1277_v12  ;;  %v1240_v12 = vmul.f32 0.6931472, %v3839_v14 }
 0x1d7   : > { %v3860_v35 = vpop.eup %3307  ;;  %3325 = vpow2.f32 %v1065_v15  ;;  %1030 = vst.msk [vmem:[%s3767_s0 + $0x58] sm:$0xff] %vm1018_vm2, %v3854_v25  ;;  %v1046_v37 = vmul.f32 0.5, %v3854_v25  ;;  %1119 = vrot.lane.b32.xlu1 %v3306_v29, %s3581_s17  ;;  %1117 = vrot.lane.b32.xlu0 %v3304_v24, %s3581_s17  ;;  %v1264_v22 = vsub.f32 0.0, %v1238_v3  ;;  %v1242_v23 = vmul.f32 0.6931472, %v3847_v19 }
 0x1d8   : > { %3327 = vpow2.f32 %v1067_v30  ;;  %1029 = vst.msk [vmem:[%s3767_s0 + $0x50] sm:$0xff] %vm1018_vm2, %v3857_v31  ;;  %v1045_v39 = vmul.f32 0.5, %v3857_v31  ;;  %v3186_v40 = vpop.f32.mrb[20].mxu1  ;;  %v3310_v44 = vpop.eup %3309  ;;  %v1226_v24 = vadd.f32 1e-08, %v1210_v13  ;;  %v1265_v29 = vsub.f32 0.0, %v1240_v12 }
 0x1d9   : > { %v3874_v45 = vadd.f32 %v3186_v40, %v3759_v11  ;;  %v999_v47 = vpop.f32.mrb[21].mxu1  ;;  %3329 = vlog2.f32 %v1221_v27  ;;  %v1073_v56 = vmul.f32 1.442695, %v1046_v37  ;;  %v1280_v38 = vadd.f32 1e-08, %v1264_v22 }
 0x1da   : > { %v3312_v49 = vpop.eup %3311  ;;  %v1071_v50 = vmul.f32 1.442695, %v1045_v39  ;;  %v3877_v51 = vadd.f32 %v3759_v11, %v999_v47  ;;  %3331 = vlog2.f32 %v1222_v32  ;;  %v1266_v39 = vsub.f32 0.0, %v1242_v23 }
 0x1db   : > { %v3314_v55 = vpop.eup %3313  ;;  %3333 = vpow2.f32 %v1069_v36  ;;  %1032 = vst.msk [vmem:[%s3767_s0 + $0x68] sm:$0xff] %vm1018_vm2, %v3874_v45  ;;  %v1048_v57 = vmul.f32 0.5, %v3874_v45  ;;  %1121 = vrot.lane.b32.xlu1 %v3310_v44, %s3581_s17  ;;  %1123 = vrot.lane.b32.xlu0 %v3312_v49, %s3581_s17  ;;  %v1281_v42 = vadd.f32 1e-08, %v1265_v29 }
 0x1dc   : > { %v3316_v58 = vpop.eup %3315  ;;  %3335 = vpow2.f32 %v1071_v50  ;;  %1031 = vst.msk [vmem:[%s3767_s0 + $0x60] sm:$0xff] %vm1018_vm2, %v3877_v51  ;;  %v1047_v60 = vmul.f32 0.5, %v3877_v51  ;;  %v3189_v61 = vpop.f32.mrb[22].mxu1  ;;  %v1244_v30 = vmul.f32 0.6931472, %v3314_v55 }
 0x1dd   : > { %v3318_v0 = vpop.eup %3317  ;;  %v3891_v1 = vadd.f32 %v3189_v61, %v3759_v11  ;;  %v1009_v2 = vpop.f32.mrb[23].mxu1  ;;  %3337 = vlog2.f32 %v1223_v48  ;;  %v1077_v17 = vmul.f32 1.442695, %v1048_v57  ;;  %v1246_v19 = vmul.f32 0.6931472, %v3316_v58 }
 0x1de   : > { %v3320_v7 = vpop.eup %3319  ;;  %v1075_v8 = vmul.f32 1.442695, %v1047_v60  ;;  %v3895_v9 = vadd.f32 %v3759_v11, %v1009_v2  ;;  %3339 = vlog2.f32 %v1224_v52  ;;  %v1267_v43 = vsub.f32 0.0, %v1244_v30 }
 0x1df   : > { %v3899_v15 = vpop.eup %3321  ;;  %3341 = vpow2.f32 %v1073_v56  ;;  %1034 = vst.msk [vmem:[%s3767_s0 + $0x78] sm:$0xff] %vm1018_vm2, %v3891_v1  ;;  %1125 = vrot.lane.b32.xlu1 %v3318_v0, %s3581_s17  ;;  %1127 = vrot.lane.b32.xlu0 %v3320_v7, %s3581_s17  ;;  %v1050_v11 = vmul.f32 0.5, %v3891_v1  ;;  %v1282_v50 = vadd.f32 1e-08, %v1266_v39  ;;  %v1268_v52 = vsub.f32 0.0, %v1246_v19 }
 0x1e0   : > { %v3906_v4 = vpop.eup %3323  ;;  %3343 = vpow2.f32 %v1075_v8  ;;  %1033 = vst.msk [vmem:[%s3767_s0 + $0x70] sm:$0xff] %vm1018_vm2, %v3895_v9  ;;  %v1049_v14 = vmul.f32 0.5, %v3895_v9  ;;  %v1283_v56 = vadd.f32 1e-08, %v1267_v43  ;;  %v1292_v61 = vmul.f32 0.6931472, %v3860_v35 }
 0x1e1   : > { %v3326_v21 = vpop.eup %3325  ;;  %3345 = vlog2.f32 %v1225_v6  ;;  %v1081_v36 = vmul.f32 1.442695, %v1050_v11  ;;  %v1284_v0 = vadd.f32 1e-08, %v1268_v52  ;;  %v1294_v11 = vmul.f32 0.6931472, %v3899_v15 }
 0x1e2   : > { %v3328_v26 = vpop.eup %3327  ;;  %v1079_v27 = vmul.f32 1.442695, %v1049_v14  ;;  %3347 = vlog2.f32 %v1278_v62  ;;  %v1296_v35 = vmul.f32 0.6931472, %v3906_v4 }
 0x1e3   : > { %v3330_v32 = vpop.eup %3329  ;;  %3349 = vpow2.f32 %v1077_v17  ;;  %1129 = vrot.lane.b32.xlu1 %v3326_v21, %s3581_s17  ;;  %1131 = vrot.lane.b32.xlu0 %v3328_v26, %s3581_s17  ;;  %v1323_v17 = vsub.f32 0.0, %v1292_v61  ;;  %v1324_v29 = vsub.f32 0.0, %v1294_v11 }
 0x1e4   : > { %v3332_v33 = vpop.eup %3331  ;;  %3351 = vpow2.f32 %v1079_v27  ;;  %v1248_v44 = vmul.f32 0.6931472, %v3330_v32  ;;  %v1325_v30 = vsub.f32 0.0, %v1296_v35 }
 0x1e5   : > { %v3334_v37 = vpop.eup %3333  ;;  %3353 = vlog2.f32 %v1226_v24  ;;  %v1250_v53 = vmul.f32 0.6931472, %v3332_v33 }
 0x1e6   : > { %v3336_v40 = vpop.eup %3335  ;;  %3355 = vlog2.f32 %v1279_v18  ;;  %v1269_v57 = vsub.f32 0.0, %v1248_v44 }
 0x1e7   : > { %v3338_v47 = vpop.eup %3337  ;;  %1133 = vrot.lane.b32.xlu1 %v3334_v37, %s3581_s17  ;;  %1135 = vrot.lane.b32.xlu0 %v3336_v40, %s3581_s17  ;;  %3357 = vpow2.f32 %v1081_v36  ;;  %v1270_v2 = vsub.f32 0.0, %v1250_v53 }
 0x1e8   : > { %v3340_v48 = vpop.eup %3339  ;;  %3359 = vlog2.f32 %v1280_v38  ;;  %v1252_v58 = vmul.f32 0.6931472, %v3338_v47  ;;  %v1285_v7 = vadd.f32 1e-08, %v1269_v57 }
 0x1e9   : > { %v3342_v49 = vpop.eup %3341  ;;  %3361 = vlog2.f32 %v1281_v42  ;;  %v1254_v3 = vmul.f32 0.6931472, %v3340_v48  ;;  %v1286_v18 = vadd.f32 1e-08, %v1270_v2 }
 0x1ea   : > { %v3344_v55 = vpop.eup %3343  ;;  %3363 = vlog2.f32 %v1282_v50  ;;  %v1271_v8 = vsub.f32 0.0, %v1252_v58 }
 0x1eb   : > { %v3346_v60 = vpop.eup %3345  ;;  %1137 = vrot.lane.b32.xlu1 %v3342_v49, %s3581_s17  ;;  %1139 = vrot.lane.b32.xlu0 %v3344_v55, %s3581_s17  ;;  %3365 = vlog2.f32 %v1283_v56  ;;  %v1272_v21 = vsub.f32 0.0, %v1254_v3 }
 0x1ec   : > { %v3348_v62 = vpop.eup %3347  ;;  %v1256_v12 = vmul.f32 0.6931472, %v3346_v60  ;;  %3367 = vlog2.f32 %v1284_v0  ;;  %v1287_v23 = vadd.f32 1e-08, %v1271_v8 }
 0x1ed   : > { %v3350_v63 = vpop.eup %3349  ;;  %3369 = vlog2.f32 %v1285_v7  ;;  %v1298_v15 = vmul.f32 0.6931472, %v3348_v62  ;;  %v1288_v33 = vadd.f32 1e-08, %v1272_v21  ;;  %v3583_v7 = vmov 8  }
 0x1ee   : > { %v3352_v6 = vpop.eup %3351  ;;  %v1273_v24 = vsub.f32 0.0, %v1256_v12  ;;  %3371 = vlog2.f32 %v1286_v18  ;;  %3283 = vset.pattern.permute.xlu0 %v3583_v7  ;;  %3284 = vset.pattern.permute.xlu1 %v3583_v7 }
 0x1ef   : > { %v3354_v13 = vpop.eup %3353  ;;  %1141 = vrot.lane.b32.xlu1 %v3350_v63, %s3581_s17  ;;  %1143 = vrot.lane.b32.xlu0 %v3352_v6, %s3581_s17  ;;  %3373 = vlog2.f32 %v1287_v23  ;;  %v1326_v39 = vsub.f32 0.0, %v1298_v15 }
 0x1f0   : > { %v3356_v14 = vpop.eup %3355  ;;  %v1258_v26 = vmul.f32 0.6931472, %v3354_v13  ;;  %v1289_v36 = vadd.f32 1e-08, %v1273_v24  ;;  %3375 = vlog2.f32 %v1288_v33  ;;  %v1086_v33 = vld [vmem:[%s3946_s22 + $0x18] sm:$0xff] }
 0x1f1   : > { %v3358_v22 = vpop.eup %3357  ;;  %v1300_v32 = vmul.f32 0.6931472, %v3356_v14 }
 0x1f2   : > { %v3360_v27 = vpop.eup %3359  ;;  %v1274_v37 = vsub.f32 0.0, %v1258_v26  ;;  %3377 = vlog2.f32 %v1289_v36  ;;  %v1085_v26 = vld [vmem:[%s3946_s22 + $0x10] sm:$0xff]  ;;  %v1087_v36 = vld [vmem:[%s3946_s22 + $0x20] sm:$0xff] }
 0x1f3   : > { %1145 = vrot.lane.b32.xlu1 %v3358_v22, %s3581_s17  ;;  %1355 = vrot.lane.b32.xlu0 %v1323_v17, %s3582_s18  ;;  %v3362_v4 = vpop.eup %3361  ;;  %v1327_v19 = vsub.f32 0.0, %v1300_v32  ;;  %v1302_v40 = vmul.f32 0.6931472, %v3360_v27  ;;  %v1083_v22 = vld [vmem:[%s3946_s22] sm:$0xff]  ;;  %v1084_v27 = vld [vmem:[%s3946_s22 + $0x8] sm:$0xff]  ;;  %s3584_s17 = smov 120  }
 0x1f4   : > { %v3364_v38 = vpop.eup %3363  ;;  %v1304_v42 = vmul.f32 0.6931472, %v3362_v4  ;;  %v1290_v44 = vadd.f32 1e-08, %v1274_v37 }
 0x1f5   : > { %v3366_v43 = vpop.eup %3365  ;;  %v1328_v48 = vsub.f32 0.0, %v1302_v40  ;;  %v1306_v50 = vmul.f32 0.6931472, %v3364_v38 }
 0x1f6   : > { %v3368_v47 = vpop.eup %3367  ;;  %v1329_v49 = vsub.f32 0.0, %v1304_v42  ;;  %v1308_v52 = vmul.f32 0.6931472, %v3366_v43  ;;  %3379 = vlog2.f32 %v1290_v44  ;;  %v1088_v43 = vld [vmem:[%s3946_s22 + $0x28] sm:$0xff]  ;;  %v1089_v44 = vld [vmem:[%s3946_s22 + $0x30] sm:$0xff] }
 0x1f7   : > { %1357 = vrot.lane.b32.xlu1 %v1324_v29, %s3582_s18  ;;  %1359 = vrot.lane.b32.xlu0 %v1325_v30, %s3582_s18  ;;  %v3370_v53 = vpop.eup %3369  ;;  %v1310_v55 = vmul.f32 0.6931472, %v3368_v47  ;;  %v1330_v57 = vsub.f32 0.0, %v1306_v50 }
 0x1f8   : > { %v3372_v56 = vpop.eup %3371  ;;  %v1331_v58 = vsub.f32 0.0, %v1308_v52  ;;  %v1312_v60 = vmul.f32 0.6931472, %v3370_v53 }
 0x1f9   : > { %v3374_v61 = vpop.eup %3373  ;;  %v1332_v62 = vsub.f32 0.0, %v1310_v55  ;;  %v1314_v2 = vmul.f32 0.6931472, %v3372_v56  ;;  %v1090_v55 = vld [vmem:[%s3946_s22 + $0x38] sm:$0xff]  ;;  %v1091_v56 = vld [vmem:[%s3946_s22 + $0x40] sm:$0xff] }
 0x1fa   : > { %v3376_v63 = vpop.eup %3375  ;;  %v1333_v0 = vsub.f32 0.0, %v1312_v60  ;;  %v1316_v3 = vmul.f32 0.6931472, %v3374_v61 }
 0x1fb   : > { %1361 = vrot.lane.b32.xlu1 %v1326_v39, %s3582_s18  ;;  %1363 = vrot.lane.b32.xlu0 %v1327_v19, %s3582_s18  ;;  %v1334_v8 = vsub.f32 0.0, %v1314_v2  ;;  %v1318_v13 = vmul.f32 0.6931472, %v3376_v63  ;;  %v1093_v2 = vld [vmem:[%s3946_s22 + $0x50] sm:$0xff] }
 0x1fc   : > { %v3378_v6 = vpop.eup %3377  ;;  %v1335_v12 = vsub.f32 0.0, %v1316_v3 }
 0x1fd   : > { %v1320_v17 = vmul.f32 0.6931472, %v3378_v6  ;;  %v1336_v35 = vsub.f32 0.0, %v1318_v13 }
 0x1ff   : > { %1365 = vrot.lane.b32.xlu1 %v1328_v48, %s3582_s18  ;;  %1367 = vrot.lane.b32.xlu0 %v1329_v49, %s3582_s18  ;;  %v1337_v14 = vsub.f32 0.0, %v1320_v17  ;;  %v1094_v17 = vld [vmem:[%s3946_s22 + $0x58] sm:$0xff] }
 0x200   : > { %v3380_v11 = vpop.eup %3379 }
 0x201   : > { %v1322_v18 = vmul.f32 0.6931472, %v3380_v11  ;;  %v1095_v11 = vld [vmem:[%s3946_s22 + $0x60] sm:$0xff] }
 0x203   : > { %1369 = vrot.lane.b32.xlu1 %v1330_v57, %s3582_s18  ;;  %1371 = vrot.lane.b32.xlu0 %v1331_v58, %s3582_s18  ;;  %v1338_v21 = vsub.f32 0.0, %v1322_v18 }
 0x207   : > { %1373 = vrot.lane.b32.xlu1 %v1332_v62, %s3582_s18  ;;  %1375 = vrot.lane.b32.xlu0 %v1333_v0, %s3582_s18  ;;  %v1092_v0 = vld [vmem:[%s3946_s22 + $0x48] sm:$0xff] }
 0x20b   : > { %1377 = vrot.lane.b32.xlu1 %v1334_v8, %s3582_s18  ;;  %1379 = vrot.lane.b32.xlu0 %v1335_v12, %s3582_s18 }
 0x20f   : > { %1381 = vrot.lane.b32.xlu1 %v1336_v35, %s3582_s18  ;;  %1383 = vrot.lane.b32.xlu0 %v1337_v14, %s3582_s18 }
 0x213   : > { %1385 = vrot.lane.b32.xlu1 %v1338_v21, %s3582_s18 }
 0x245   : > { %v1116_v23 = vpop.permute.xlu0 %1115 }
 0x246   : > { %v1163_v24 = vmul.f32 %v1116_v23, %v1083_v22 }
 0x248   : > { %v1179_v29 = vadd.f32 %v1163_v24, %v3774_v20  ;;  %v1096_v24 = vld [vmem:[%s3946_s22 + $0x68] sm:$0xff] }
 0x249   : > { %v1120_v30 = vpop.permute.xlu1 %1119  ;;  %v1118_v15 = vpop.permute.xlu0 %1117 }
 0x24a   : > { %v1165_v32 = vmul.f32 %v1120_v30, %v1085_v26  ;;  %v1164_v4 = vmul.f32 %v1118_v15, %v1084_v27  ;;  %3192 = vmatprep.mubr.msk.f32.mxu0 %vm1619_vm3, %v1179_v29  ;;  %v1097_v26 = vld [vmem:[%s3946_s22 + $0x70] sm:$0xff] }
 0x24c   : > { %v1181_v37 = vadd.f32 %v1165_v32, %v3790_v34  ;;  %v1180_v38 = vadd.f32 %v1164_v4, %v3771_v16 }
 0x24d   : > { %v1122_v39 = vpop.permute.xlu1 %1121  ;;  %v1124_v19 = vpop.permute.xlu0 %1123 }
 0x24e   : > { %v1166_v40 = vmul.f32 %v1122_v39, %v1086_v33  ;;  %v1167_v42 = vmul.f32 %v1124_v19, %v1087_v36  ;;  %3193 = vmatmul.mubr.msk.f32.vlgmr.msra.gmra.mrb[8].mxu0 %vm1619_vm3, %v1180_v38  ;;  %v1098_v33 = vld [vmem:[%s3946_s22 + $0x78] sm:$0xff] }
 0x24f   : > { %3195 = vmatprep.mubr.msk.f32.mxu0 %vm1619_vm3, %v1181_v37 }
 0x250   : > { %v1182_v47 = vadd.f32 %v1166_v40, %v3787_v28  ;;  %v1183_v48 = vadd.f32 %v1167_v42, %v3804_v46 }
 0x251   : > { %v1126_v49 = vpop.permute.xlu1 %1125  ;;  %v1128_v50 = vpop.permute.xlu0 %1127 }
 0x252   : > { %v1168_v52 = vmul.f32 %v1126_v49, %v1088_v43  ;;  %v1169_v53 = vmul.f32 %v1128_v50, %v1089_v44  ;;  %3196 = vmatmul.mubr.msk.f32.gmra.mrb[10].mxu0 %vm1619_vm3, %v1182_v47 }
 0x253   : > { %3198 = vmatprep.mubr.msk.f32.mxu0 %vm1619_vm3, %v1183_v48 }
 0x254   : > { %v1184_v57 = vadd.f32 %v1168_v52, %v3801_v41  ;;  %v1185_v58 = vadd.f32 %v1169_v53, %v3820_v59 }
 0x255   : > { %v1130_v60 = vpop.permute.xlu1 %1129  ;;  %v1132_v61 = vpop.permute.xlu0 %1131 }
 0x256   : > { %v1170_v62 = vmul.f32 %v1130_v60, %v1090_v55  ;;  %v1171_v63 = vmul.f32 %v1132_v61, %v1091_v56  ;;  %3199 = vmatmul.mubr.msk.f32.gmra.mrb[12].mxu0 %vm1619_vm3, %v1184_v57 }
 0x257   : > { %3201 = vmatprep.mubr.msk.f32.mxu0 %vm1619_vm3, %v1185_v58 }
 0x258   : > { %v1186_v3 = vadd.f32 %v1170_v62, %v3817_v54  ;;  %v1187_v6 = vadd.f32 %v1171_v63, %v3836_v10 }
 0x259   : > { %v1134_v7 = vpop.permute.xlu1 %1133  ;;  %v1136_v8 = vpop.permute.xlu0 %1135 }
 0x25a   : > { %v1172_v12 = vmul.f32 %v1134_v7, %v1092_v0  ;;  %v1173_v13 = vmul.f32 %v1136_v8, %v1093_v2  ;;  %3202 = vmatmul.mubr.msk.f32.gmra.mrb[14].mxu0 %vm1619_vm3, %v1186_v3 }
 0x25b   : > { %3204 = vmatprep.mubr.msk.f32.mxu0 %vm1619_vm3, %v1187_v6 }
 0x25c   : > { %v1188_v35 = vadd.f32 %v1172_v12, %v3833_v5  ;;  %v1189_v14 = vadd.f32 %v1173_v13, %v3857_v31 }
 0x25d   : > { %v1138_v18 = vpop.permute.xlu1 %1137  ;;  %v1140_v21 = vpop.permute.xlu0 %1139 }
 0x25e   : > { %v1174_v22 = vmul.f32 %v1138_v18, %v1094_v17  ;;  %v1175_v23 = vmul.f32 %v1140_v21, %v1095_v11  ;;  %3205 = vmatmul.mubr.msk.f32.gmra.mrb[16].mxu0 %vm1619_vm3, %v1188_v35 }
 0x25f   : > { %3207 = vmatprep.mubr.msk.f32.mxu0 %vm1619_vm3, %v1189_v14 }
 0x260   : > { %v1190_v27 = vadd.f32 %v1174_v22, %v3854_v25  ;;  %v1191_v29 = vadd.f32 %v1175_v23, %v3877_v51 }
 0x261   : > { %v1142_v30 = vpop.permute.xlu1 %1141  ;;  %v1144_v15 = vpop.permute.xlu0 %1143 }
 0x262   : > { %v1176_v32 = vmul.f32 %v1142_v30, %v1096_v24  ;;  %v1177_v4 = vmul.f32 %v1144_v15, %v1097_v26  ;;  %3208 = vmatmul.mubr.msk.f32.gmra.mrb[18].mxu0 %vm1619_vm3, %v1190_v27 }
 0x263   : > { %3210 = vmatprep.mubr.msk.f32.mxu0 %vm1619_vm3, %v1191_v29 }
 0x264   : > { %v1192_v36 = vadd.f32 %v1176_v32, %v3874_v45  ;;  %v1193_v37 = vadd.f32 %v1177_v4, %v3895_v9 }
 0x265   : > { %v1146_v38 = vpop.permute.xlu1 %1145  ;;  %v1356_v39 = vpop.permute.xlu0 %1355 }
 0x266   : > { %v1178_v19 = vmul.f32 %v1146_v38, %v1098_v33  ;;  %v1403_v40 = vadd.f32 %v1356_v39, %v3774_v20  ;;  %3211 = vmatmul.mubr.msk.f32.gmra.mrb[20].mxu0 %vm1619_vm3, %v1192_v36 }
 0x267   : > { %3213 = vmatprep.mubr.msk.f32.mxu0 %vm1619_vm3, %v1193_v37 }
 0x268   : > { %v1194_v42 = vadd.f32 %v1178_v19, %v3891_v1  ;;  %v2950_v43 = vmul.f32 -1.442695, %v1403_v40 }
 0x269   : > { %v1358_v44 = vpop.permute.xlu1 %1357  ;;  %v1360_v47 = vpop.permute.xlu0 %1359 }
 0x26a   : > { %3381 = vpow2.f32 %v2950_v43  ;;  %v1404_v48 = vadd.f32 %v1358_v44, %v3771_v16  ;;  %v1405_v49 = vadd.f32 %v1360_v47, %v3790_v34  ;;  %3214 = vmatmul.mubr.msk.f32.gmra.mrb[22].mxu0 %vm1619_vm3, %v1194_v42 }
 0x26c   : > { %v2951_v50 = vmul.f32 -1.442695, %v1404_v48  ;;  %v2952_v52 = vmul.f32 -1.442695, %v1405_v49 }
 0x26d   : > { %v1362_v53 = vpop.permute.xlu1 %1361  ;;  %v1364_v20 = vpop.permute.xlu0 %1363 }
 0x26e   : > { %3383 = vpow2.f32 %v2951_v50  ;;  %v1406_v55 = vadd.f32 %v1362_v53, %v3787_v28  ;;  %v1407_v56 = vadd.f32 %v1364_v20, %v3804_v46 }
 0x26f   : > { %3385 = vpow2.f32 %v2952_v52 }
 0x270   : > { %v2953_v57 = vmul.f32 -1.442695, %v1406_v55  ;;  %v2954_v58 = vmul.f32 -1.442695, %v1407_v56 }
 0x271   : > { %v1366_v60 = vpop.permute.xlu1 %1365  ;;  %v1368_v61 = vpop.permute.xlu0 %1367 }
 0x272   : > { %3387 = vpow2.f32 %v2953_v57  ;;  %v1408_v16 = vadd.f32 %v1366_v60, %v3801_v41  ;;  %v1409_v34 = vadd.f32 %v1368_v61, %v3820_v59 }
 0x273   : > { %3389 = vpow2.f32 %v2954_v58 }
 0x274   : > { %v3382_v62 = vpop.eup %3381  ;;  %v2955_v63 = vmul.f32 -1.442695, %v1408_v16  ;;  %v2956_v0 = vmul.f32 -1.442695, %v1409_v34 }
 0x275   : > { %v1467_v2 = vadd.f32 1.0, %v3382_v62  ;;  %v1370_v3 = vpop.permute.xlu1 %1369  ;;  %v1372_v6 = vpop.permute.xlu0 %1371 }
 0x276   : > { %3391 = vpow2.f32 %v2955_v63  ;;  %v1410_v28 = vadd.f32 %v1370_v3, %v3817_v54  ;;  %v1411_v46 = vadd.f32 %v1372_v6, %v3836_v10 }
 0x277   : > { %3393 = vrcp.f32 %v1467_v2 }
 0x278   : > { %v3384_v7 = vpop.eup %3383  ;;  %3395 = vpow2.f32 %v2956_v0  ;;  %v2957_v8 = vmul.f32 -1.442695, %v1410_v28  ;;  %v2958_v13 = vmul.f32 -1.442695, %v1411_v46 }
 0x279   : > { %v3386_v12 = vpop.eup %3385  ;;  %v1468_v41 = vadd.f32 1.0, %v3384_v7  ;;  %v1374_v59 = vpop.permute.xlu1 %1373 }
 0x27a   : > { %v1376_v17 = vpop.permute.xlu0 %1375  ;;  %v1469_v11 = vadd.f32 1.0, %v3386_v12  ;;  %3397 = vpow2.f32 %v2957_v8  ;;  %v1412_v35 = vadd.f32 %v1374_v59, %v3833_v5  ;;  %v1856_v59 = vld [vmem:[%s4526_s11] sm:$0xff] }
 0x27b   : > { %v1413_v14 = vadd.f32 %v1376_v17, %v3857_v31  ;;  %3399 = vrcp.f32 %v1468_v41  ;;  %3216 = vmatprep.subr.mxu1 %v1856_v59  ;;  %v2153_v17 = vld [vmem:[%s4528_s13] sm:$0xff] }
 0x27c   : > { %v3388_v18 = vpop.eup %3387  ;;  %3401 = vrcp.f32 %v1469_v11  ;;  %v2959_v54 = vmul.f32 -1.442695, %v1412_v35  ;;  %3217 = vmatpush3.msra.mxu1 %v1856_v59  ;;  %3242 = vmatprep.subr.mxu0 %v2153_v17 }
 0x27d   : > { %v3390_v10 = vpop.eup %3389  ;;  %v1470_v21 = vadd.f32 1.0, %v3388_v18  ;;  %3403 = vpow2.f32 %v2958_v13  ;;  %v2960_v22 = vmul.f32 -1.442695, %v1413_v14  ;;  %v1378_v23 = vpop.permute.xlu1 %1377  ;;  %3243 = vmatpush3.msra.mxu0 %v2153_v17 }
 0x27e   : > { %v1380_v24 = vpop.permute.xlu0 %1379  ;;  %v1471_v26 = vadd.f32 1.0, %v3390_v10  ;;  %3405 = vpow2.f32 %v2959_v54  ;;  %v1414_v27 = vadd.f32 %v1378_v23, %v3854_v25 }
 0x27f   : > { %v1415_v29 = vadd.f32 %v1380_v24, %v3877_v51  ;;  %3407 = vrcp.f32 %v1470_v21  ;;  %v4033_v21 = vld [vmem:[%s4524_s9] ss:$0 sm:$0xff] }
 0x280   : > { %v3392_v5 = vpop.eup %3391  ;;  %3409 = vrcp.f32 %v1471_v26  ;;  %v2961_v31 = vmul.f32 -1.442695, %v1414_v27  ;;  %v4042_v26 = vld [vmem:[%s4525_s10] ss:$0 sm:$0xff] }
 0x281   : > { %v2962_v30 = vmul.f32 -1.442695, %v1415_v29  ;;  %v3394_v15 = vpop.eup %3393  ;;  %v1472_v32 = vadd.f32 1.0, %v3392_v5  ;;  %3411 = vpow2.f32 %v2960_v22  ;;  %v1382_v4 = vpop.permute.xlu1 %1381 }
 0x282   : > { %v1384_v33 = vpop.permute.xlu0 %1383  ;;  %v3396_v36 = vpop.eup %3395  ;;  %3413 = vpow2.f32 %v2961_v31  ;;  %v1416_v37 = vadd.f32 %v1382_v4, %v3874_v45  ;;  %1519 = vperm.xlu0 %3283, %v3394_v15  }
 0x283   : > { %v1417_v38 = vadd.f32 %v1384_v33, %v3895_v9  ;;  %3415 = vrcp.f32 %v1472_v32  ;;  %v1473_v25 = vadd.f32 1.0, %v3396_v36 }
 0x284   : > { %v3398_v51 = vpop.eup %3397  ;;  %3417 = vpow2.f32 %v2962_v30  ;;  %v2963_v39 = vmul.f32 -1.442695, %v1416_v37 }
 0x285   : > { %v2964_v19 = vmul.f32 -1.442695, %v1417_v38  ;;  %v3400_v40 = vpop.eup %3399  ;;  %3419 = vrcp.f32 %v1473_v25  ;;  %v1474_v42 = vadd.f32 1.0, %v3398_v51  ;;  %v1386_v43 = vpop.permute.xlu1 %1385 }
 0x286   : > { %v3402_v44 = vpop.eup %3401  ;;  %3421 = vpow2.f32 %v2963_v39  ;;  %v1418_v47 = vadd.f32 %v1386_v43, %v3891_v1  ;;  %1524 = vperm.xlu1 %3284, %v3400_v40  }
 0x287   : > { %v3404_v48 = vpop.eup %3403  ;;  %3423 = vrcp.f32 %v1474_v42 }
 0x288   : > { %v3406_v45 = vpop.eup %3405  ;;  %v1475_v9 = vadd.f32 1.0, %v3404_v48  ;;  %3425 = vpow2.f32 %v2964_v19  ;;  %v2965_v49 = vmul.f32 -1.442695, %v1418_v47 }
 0x289   : > { %v3408_v50 = vpop.eup %3407  ;;  %v1476_v52 = vadd.f32 1.0, %v3406_v45 }
 0x28a   : > { %v3410_v53 = vpop.eup %3409  ;;  %3427 = vrcp.f32 %v1475_v9  ;;  %1534 = vperm.xlu0 %3283, %v3408_v50   ;;  %1529 = vperm.xlu1 %3284, %v3402_v44  }
 0x28b   : > { %v3412_v20 = vpop.eup %3411  ;;  %3429 = vrcp.f32 %v1476_v52 }
 0x28c   : > { %v3414_v55 = vpop.eup %3413  ;;  %v1477_v56 = vadd.f32 1.0, %v3412_v20  ;;  %3431 = vpow2.f32 %v2965_v49 }
 0x28d   : > { %v3416_v57 = vpop.eup %3415  ;;  %v1478_v1 = vadd.f32 1.0, %v3414_v55 }
 0x28e   : > { %v3418_v58 = vpop.eup %3417  ;;  %3433 = vrcp.f32 %v1477_v56  ;;  %1544 = vperm.xlu0 %3283, %v3416_v57   ;;  %1539 = vperm.xlu1 %3284, %v3410_v53  }
 0x28f   : > { %v3420_v60 = vpop.eup %3419  ;;  %3435 = vrcp.f32 %v1478_v1  ;;  %v1479_v61 = vadd.f32 1.0, %v3418_v58 }
 0x290   : > { %v3422_v16 = vpop.eup %3421 }
 0x291   : > { %v3424_v34 = vpop.eup %3423  ;;  %v1480_v62 = vadd.f32 1.0, %v3422_v16  ;;  %3437 = vrcp.f32 %v1479_v61 }
 0x292   : > { %v3426_v63 = vpop.eup %3425  ;;  %1554 = vperm.xlu0 %3283, %v3424_v34   ;;  %1549 = vperm.xlu1 %3284, %v3420_v60  }
 0x293   : > { %3439 = vrcp.f32 %v1480_v62  ;;  %v1481_v0 = vadd.f32 1.0, %v3426_v63 }
 0x294   : > { %v3428_v2 = vpop.eup %3427 }
 0x295   : > { %v3430_v3 = vpop.eup %3429  ;;  %3441 = vrcp.f32 %v1481_v0 }
 0x296   : > { %v3432_v6 = vpop.eup %3431  ;;  %1564 = vperm.xlu0 %3283, %v3430_v3   ;;  %1559 = vperm.xlu1 %3284, %v3428_v2  }
 0x297   : > { %v1482_v28 = vadd.f32 1.0, %v3432_v6 }
 0x298   : > { %v3434_v46 = vpop.eup %3433 }
 0x299   : > { %v3436_v7 = vpop.eup %3435  ;;  %3443 = vrcp.f32 %v1482_v28 }
 0x29a   : > { %1574 = vperm.xlu0 %3283, %v3436_v7   ;;  %1569 = vperm.xlu1 %3284, %v3434_v46  }
 0x29b   : > { %v3438_v8 = vpop.eup %3437 }
 0x29d   : > { %v3440_v12 = vpop.eup %3439 }
 0x29e   : > { %1584 = vperm.xlu0 %3283, %v3440_v12   ;;  %1579 = vperm.xlu1 %3284, %v3438_v8  }
 0x29f   : > { %v3442_v41 = vpop.eup %3441 }
 0x2a2   : > { %1589 = vperm.xlu1 %3284, %v3442_v41  }
 0x2a3   : > { %v3444_v13 = vpop.eup %3443 }
 0x2a4   : > { %1594 = vperm.xlu0 %3283, %v3444_v13  }
 0x301   : > { %v4020_v35 = vpop.permute.xlu0 %1519 }
 0x302   : > { %v1603_v27 = vmul.f32 %v4033_v21, %v4020_v35 }
 0x305   : > { %v4018_v11 = vpop.permute.xlu1 %1524 }
 0x306   : > { %v1604_v22 = vmul.f32 %v4033_v21, %v4018_v11 }
 0x309   : > { %v4022_v14 = vpop.permute.xlu0 %1534  ;;  %v4024_v18 = vpop.permute.xlu1 %1529 }
 0x30a   : > { %v1606_v32 = vmul.f32 %v4033_v21, %v4022_v14  ;;  %v1605_v36 = vmul.f32 %v4033_v21, %v4024_v18 }
 0x30d   : > { %v4026_v54 = vpop.permute.xlu0 %1544  ;;  %v4028_v10 = vpop.permute.xlu1 %1539 }
 0x30e   : > { %v1608_v43 = vmul.f32 %v4033_v21, %v4026_v54  ;;  %v1607_v48 = vmul.f32 %v4033_v21, %v4028_v10 }
 0x311   : > { %v4037_v23 = vpop.permute.xlu0 %1554  ;;  %v4046_v29 = vpop.permute.xlu1 %1549 }
 0x312   : > { %v1610_v20 = vmul.f32 %v4033_v21, %v4037_v23  ;;  %v1609_v1 = vmul.f32 %v4033_v21, %v4046_v29 }
 0x315   : > { %v4054_v51 = vpop.permute.xlu0 %1564  ;;  %v4056_v40 = vpop.permute.xlu1 %1559 }
 0x316   : > { %v1612_v0 = vmul.f32 %v4033_v21, %v4054_v51  ;;  %v1611_v6 = vmul.f32 %v4033_v21, %v4056_v40 }
 0x319   : > { %v4072_v55 = vpop.permute.xlu0 %1574  ;;  %v4079_v58 = vpop.permute.xlu1 %1569 }
 0x31a   : > { %v1614_v17 = vmul.f32 %v4033_v21, %v4072_v55 }
 0x31d   : > { %v4092_v8 = vpop.permute.xlu0 %1584  ;;  %v4094_v13 = vpop.permute.xlu1 %1579 }
 0x321   : > { %v3194_v24 = vpop.f32.mrb[8].mxu0 }
 0x322   : > { %v1744_v5 = vadd.f32 %v3194_v24, %v1604_v22  ;;  %v1738_v31 = vpop.f32.mrb[9].mxu0 }
 0x323   : > { %v1739_v30 = vadd.f32 %v1738_v31, %v1603_v27  ;;  %v1613_v27 = vmul.f32 %v4033_v21, %v4079_v58 }
 0x324   : > { %v1825_v15 = vadd.f32 %v4042_v26, %v1744_v5 }
 0x325   : > { %v1824_v4 = vadd.f32 %v4042_v26, %v1739_v30  ;;  %v3197_v33 = vpop.f32.mrb[10].mxu0 }
 0x326   : > { %v1841_v37 = vmax.f32 %v1825_v15, 0.0  ;;  %v1754_v38 = vadd.f32 %v3197_v33, %v1606_v32  ;;  %v1748_v25 = vpop.f32.mrb[11].mxu0  ;;  %v1616_v33 = vmul.f32 %v4033_v21, %v4092_v8 }
 0x327   : > { %v1840_v39 = vmax.f32 %v1824_v4, 0.0  ;;  %v1749_v19 = vadd.f32 %v1748_v25, %v1605_v36  ;;  %v4110_v36 = vpop.permute.xlu0 %1594  ;;  %v1615_v25 = vmul.f32 %v4033_v21, %v4094_v13 }
 0x328   : > { %v1827_v42 = vadd.f32 %v4042_v26, %v1754_v38  ;;  %2163 = vrot.lane.b32.xlu0 %v1841_v37, %s3584_s17 }
 0x329   : > { %v1826_v44 = vadd.f32 %v4042_v26, %v1749_v19  ;;  %v3200_v47 = vpop.f32.mrb[12].mxu0  ;;  %2161 = vrot.lane.b32.xlu1 %v1840_v39, %s3584_s17  ;;  %3218 = vmatprep.mubr.msk.f32.mxu1 %vm607_vm0, %v1840_v39  ;;  %v4117_v39 = vpop.permute.xlu1 %1589 }
 0x32a   : > { %v1843_v45 = vmax.f32 %v1827_v42, 0.0  ;;  %v1764_v9 = vadd.f32 %v3200_v47, %v1608_v43  ;;  %v1758_v49 = vpop.f32.mrb[13].mxu0  ;;  %3219 = vmatmul.mubr.msk.f32.vlgmr.msra.gmra.mrb[24].mxu1 %vm607_vm0, %v1841_v37 }
 0x32b   : > { %v1842_v50 = vmax.f32 %v1826_v44, 0.0  ;;  %v1759_v52 = vadd.f32 %v1758_v49, %v1607_v48 }
 0x32c   : > { %v1829_v53 = vadd.f32 %v4042_v26, %v1764_v9  ;;  %2167 = vrot.lane.b32.xlu0 %v1843_v45, %s3584_s17 }
 0x32d   : > { %v1828_v56 = vadd.f32 %v4042_v26, %v1759_v52  ;;  %v3203_v57 = vpop.f32.mrb[14].mxu0  ;;  %2165 = vrot.lane.b32.xlu1 %v1842_v50, %s3584_s17  ;;  %3221 = vmatprep.mubr.msk.f32.mxu1 %vm607_vm0, %v1842_v50  ;;  %v1617_v50 = vmul.f32 %v4033_v21, %v4117_v39 }
 0x32e   : > { %v1845_v60 = vmax.f32 %v1829_v53, 0.0  ;;  %v1774_v61 = vadd.f32 %v3203_v57, %v1610_v20  ;;  %v1768_v16 = vpop.f32.mrb[15].mxu0  ;;  %3222 = vmatmul.mubr.msk.f32.gmra.mrb[26].mxu1 %vm607_vm0, %v1843_v45  ;;  %v1618_v45 = vmul.f32 %v4033_v21, %v4110_v36 }
 0x32f   : > { %v1844_v34 = vmax.f32 %v1828_v56, 0.0  ;;  %v1769_v62 = vadd.f32 %v1768_v16, %v1609_v1 }
 0x330   : > { %v1831_v63 = vadd.f32 %v4042_v26, %v1774_v61  ;;  %2171 = vrot.lane.b32.xlu0 %v1845_v60, %s3584_s17 }
 0x331   : > { %v1830_v2 = vadd.f32 %v4042_v26, %v1769_v62  ;;  %v3206_v3 = vpop.f32.mrb[16].mxu0  ;;  %2169 = vrot.lane.b32.xlu1 %v1844_v34, %s3584_s17  ;;  %3224 = vmatprep.mubr.msk.f32.mxu1 %vm607_vm0, %v1844_v34 }
 0x332   : > { %v1847_v28 = vmax.f32 %v1831_v63, 0.0  ;;  %v1784_v46 = vadd.f32 %v3206_v3, %v1612_v0  ;;  %v1778_v7 = vpop.f32.mrb[17].mxu0  ;;  %3225 = vmatmul.mubr.msk.f32.gmra.mrb[28].mxu1 %vm607_vm0, %v1845_v60 }
 0x333   : > { %v1846_v12 = vmax.f32 %v1830_v2, 0.0  ;;  %v1779_v41 = vadd.f32 %v1778_v7, %v1611_v6 }
 0x334   : > { %v1833_v59 = vadd.f32 %v4042_v26, %v1784_v46  ;;  %2175 = vrot.lane.b32.xlu0 %v1847_v28, %s3584_s17 }
 0x335   : > { %v1832_v22 = vadd.f32 %v4042_v26, %v1779_v41  ;;  %v3209_v24 = vpop.f32.mrb[18].mxu0  ;;  %2173 = vrot.lane.b32.xlu1 %v1846_v12, %s3584_s17  ;;  %3227 = vmatprep.mubr.msk.f32.mxu1 %vm607_vm0, %v1846_v12 }
 0x336   : > { %v1849_v5 = vmax.f32 %v1833_v59, 0.0  ;;  %v1794_v31 = vadd.f32 %v3209_v24, %v1614_v17  ;;  %v1788_v30 = vpop.f32.mrb[19].mxu0  ;;  %3228 = vmatmul.mubr.msk.f32.gmra.mrb[30].mxu1 %vm607_vm0, %v1847_v28 }
 0x337   : > { %v1848_v15 = vmax.f32 %v1832_v22, 0.0  ;;  %v1789_v32 = vadd.f32 %v1788_v30, %v1613_v27  ;;  %v4159_v22 = vld [vmem:[%s4527_s12] ss:$0 sm:$0xff] }
 0x338   : > { %v1835_v4 = vadd.f32 %v4042_v26, %v1794_v31  ;;  %2179 = vrot.lane.b32.xlu0 %v1849_v5, %s3584_s17 }
 0x339   : > { %v1834_v37 = vadd.f32 %v4042_v26, %v1789_v32  ;;  %v3212_v38 = vpop.f32.mrb[20].mxu0  ;;  %2177 = vrot.lane.b32.xlu1 %v1848_v15, %s3584_s17  ;;  %3230 = vmatprep.mubr.msk.f32.mxu1 %vm607_vm0, %v1848_v15 }
 0x33a   : > { %v1851_v19 = vmax.f32 %v1835_v4, 0.0  ;;  %v1804_v42 = vadd.f32 %v3212_v38, %v1616_v33  ;;  %v1798_v43 = vpop.f32.mrb[21].mxu0  ;;  %3231 = vmatmul.mubr.msk.f32.gmra.mrb[32].mxu1 %vm607_vm0, %v1849_v5 }
 0x33b   : > { %v1850_v44 = vmax.f32 %v1834_v37, 0.0  ;;  %v1799_v47 = vadd.f32 %v1798_v43, %v1615_v25 }
 0x33c   : > { %v1837_v48 = vadd.f32 %v4042_v26, %v1804_v42  ;;  %2183 = vrot.lane.b32.xlu0 %v1851_v19, %s3584_s17 }
 0x33d   : > { %v1836_v9 = vadd.f32 %v4042_v26, %v1799_v47  ;;  %v3215_v49 = vpop.f32.mrb[22].mxu0  ;;  %2181 = vrot.lane.b32.xlu1 %v1850_v44, %s3584_s17  ;;  %3233 = vmatprep.mubr.msk.f32.mxu1 %vm607_vm0, %v1850_v44 }
 0x33e   : > { %v1853_v52 = vmax.f32 %v1837_v48, 0.0  ;;  %v1814_v53 = vadd.f32 %v3215_v49, %v1618_v45  ;;  %v1808_v20 = vpop.f32.mrb[23].mxu0  ;;  %3234 = vmatmul.mubr.msk.f32.gmra.mrb[34].mxu1 %vm607_vm0, %v1851_v19 }
 0x33f   : > { %v1852_v56 = vmax.f32 %v1836_v9, 0.0  ;;  %v1809_v57 = vadd.f32 %v1808_v20, %v1617_v50 }
 0x340   : > { %v1839_v1 = vadd.f32 %v4042_v26, %v1814_v53  ;;  %2187 = vrot.lane.b32.xlu0 %v1853_v52, %s3584_s17 }
 0x341   : > { %v1838_v60 = vadd.f32 %v4042_v26, %v1809_v57  ;;  %2185 = vrot.lane.b32.xlu1 %v1852_v56, %s3584_s17  ;;  %3236 = vmatprep.mubr.msk.f32.mxu1 %vm607_vm0, %v1852_v56 }
 0x342   : > { %v1855_v61 = vmax.f32 %v1839_v1, 0.0  ;;  %3237 = vmatmul.mubr.msk.f32.gmra.mrb[36].mxu1 %vm607_vm0, %v1853_v52 }
 0x343   : > { %v1854_v21 = vmax.f32 %v1838_v60, 0.0 }
 0x344   : > { %2191 = vrot.lane.b32.xlu0 %v1855_v61, %s3584_s17 }
 0x345   : > { %2189 = vrot.lane.b32.xlu1 %v1854_v21, %s3584_s17  ;;  %3239 = vmatprep.mubr.msk.f32.mxu1 %vm607_vm0, %v1854_v21 }
 0x346   : > { %3240 = vmatmul.mubr.msk.f32.gmra.mrb[38].mxu1 %vm607_vm0, %v1855_v61 }
 0x39a   : > { %v2164_v16 = vpop.permute.xlu0 %2163 }
 0x39b   : > { %v2162_v34 = vpop.permute.xlu1 %2161 }
 0x39c   : > { %3244 = vmatprep.mubr.msk.f32.mxu0 %vm607_vm0, %v2162_v34 }
 0x39d   : > { %3245 = vmatmul.mubr.msk.f32.vlgmr.msra.gmra.mrb[24].mxu0 %vm607_vm0, %v2164_v16 }
 0x39e   : > { %v2168_v26 = vpop.permute.xlu0 %2167 }
 0x39f   : > { %v2166_v62 = vpop.permute.xlu1 %2165 }
 0x3a0   : > { %3247 = vmatprep.mubr.msk.f32.mxu0 %vm607_vm0, %v2166_v62 }
 0x3a1   : > { %3248 = vmatmul.mubr.msk.f32.gmra.mrb[26].mxu0 %vm607_vm0, %v2168_v26 }
 0x3a2   : > { %v2172_v63 = vpop.permute.xlu0 %2171 }
 0x3a3   : > { %v2170_v0 = vpop.permute.xlu1 %2169 }
 0x3a4   : > { %3250 = vmatprep.mubr.msk.f32.mxu0 %vm607_vm0, %v2170_v0 }
 0x3a5   : > { %3251 = vmatmul.mubr.msk.f32.gmra.mrb[28].mxu0 %vm607_vm0, %v2172_v63 }
 0x3a6   : > { %v2176_v2 = vpop.permute.xlu0 %2175 }
 0x3a7   : > { %v2174_v3 = vpop.permute.xlu1 %2173 }
 0x3a8   : > { %3253 = vmatprep.mubr.msk.f32.mxu0 %vm607_vm0, %v2174_v3 }
 0x3a9   : > { %3254 = vmatmul.mubr.msk.f32.gmra.mrb[30].mxu0 %vm607_vm0, %v2176_v2 }
 0x3aa   : > { %v2180_v6 = vpop.permute.xlu0 %2179 }
 0x3ab   : > { %v2178_v28 = vpop.permute.xlu1 %2177 }
 0x3ac   : > { %3256 = vmatprep.mubr.msk.f32.mxu0 %vm607_vm0, %v2178_v28 }
 0x3ad   : > { %3257 = vmatmul.mubr.msk.f32.gmra.mrb[32].mxu0 %vm607_vm0, %v2180_v6 }
 0x3ae   : > { %v2184_v46 = vpop.permute.xlu0 %2183 }
 0x3af   : > { %v2182_v7 = vpop.permute.xlu1 %2181 }
 0x3b0   : > { %3259 = vmatprep.mubr.msk.f32.mxu0 %vm607_vm0, %v2182_v7 }
 0x3b1   : > { %3260 = vmatmul.mubr.msk.f32.gmra.mrb[34].mxu0 %vm607_vm0, %v2184_v46 }
 0x3b2   : > { %v2188_v12 = vpop.permute.xlu0 %2187 }
 0x3b3   : > { %v2186_v41 = vpop.permute.xlu1 %2185 }
 0x3b4   : > { %3262 = vmatprep.mubr.msk.f32.mxu0 %vm607_vm0, %v2186_v41 }
 0x3b5   : > { %3263 = vmatmul.mubr.msk.f32.gmra.mrb[36].mxu0 %vm607_vm0, %v2188_v12 }
 0x3b6   : > { %v2192_v17 = vpop.permute.xlu0 %2191 }
 0x3b7   : > { %v2190_v59 = vpop.permute.xlu1 %2189 }
 0x3b8   : > { %3265 = vmatprep.mubr.msk.f32.mxu0 %vm607_vm0, %v2190_v59 }
 0x3b9   : > { %3266 = vmatmul.mubr.msk.f32.gmra.mrb[38].mxu0 %vm607_vm0, %v2192_v17 }
 0x3fd   : > { %v3220_v24 = vpop.f32.mrb[24].mxu1 }
 0x3fe   : > { %v1984_v27 = vadd.f32 %v3220_v24, %v4159_v22  ;;  %v1978_v5 = vpop.f32.mrb[25].mxu1 }
 0x3ff   : > { %v1979_v31 = vadd.f32 %v4159_v22, %v1978_v5 }
 0x400   : > { %v3003_v30 = vmul.f32 -1.442695, %v1984_v27 }
 0x401   : > { %v3002_v15 = vmul.f32 -1.442695, %v1979_v31  ;;  %v3223_v32 = vpop.f32.mrb[26].mxu1 }
 0x402   : > { %3445 = vpow2.f32 %v3003_v30  ;;  %v1994_v4 = vadd.f32 %v3223_v32, %v4159_v22  ;;  %v1988_v33 = vpop.f32.mrb[27].mxu1 }
 0x403   : > { %3447 = vpow2.f32 %v3002_v15  ;;  %v1989_v37 = vadd.f32 %v4159_v22, %v1988_v33 }
 0x404   : > { %v3005_v38 = vmul.f32 -1.442695, %v1994_v4 }
 0x405   : > { %v3004_v25 = vmul.f32 -1.442695, %v1989_v37  ;;  %v3226_v19 = vpop.f32.mrb[28].mxu1 }
 0x406   : > { %3449 = vpow2.f32 %v3005_v38  ;;  %v2004_v42 = vadd.f32 %v3226_v19, %v4159_v22  ;;  %v1998_v43 = vpop.f32.mrb[29].mxu1 }
 0x407   : > { %3451 = vpow2.f32 %v3004_v25  ;;  %v1999_v44 = vadd.f32 %v4159_v22, %v1998_v43 }
 0x408   : > { %v3007_v47 = vmul.f32 -1.442695, %v2004_v42 }
 0x409   : > { %v3006_v48 = vmul.f32 -1.442695, %v1999_v44  ;;  %v3229_v45 = vpop.f32.mrb[30].mxu1 }
 0x40a   : > { %3453 = vpow2.f32 %v3007_v47  ;;  %v2014_v9 = vadd.f32 %v3229_v45, %v4159_v22  ;;  %v2008_v49 = vpop.f32.mrb[31].mxu1 }
 0x40b   : > { %3455 = vpow2.f32 %v3006_v48  ;;  %v2009_v50 = vadd.f32 %v4159_v22, %v2008_v49 }
 0x40c   : > { %v3446_v52 = vpop.eup %3445  ;;  %v3009_v53 = vmul.f32 -1.442695, %v2014_v9 }
 0x40d   : > { %v3448_v20 = vpop.eup %3447  ;;  %v2106_v56 = vadd.f32 1.0, %v3446_v52  ;;  %v3008_v57 = vmul.f32 -1.442695, %v2009_v50  ;;  %v3232_v1 = vpop.f32.mrb[32].mxu1 }
 0x40e   : > { %v2105_v60 = vadd.f32 1.0, %v3448_v20  ;;  %3457 = vpow2.f32 %v3009_v53  ;;  %v2024_v61 = vadd.f32 %v3232_v1, %v4159_v22  ;;  %v2018_v21 = vpop.f32.mrb[33].mxu1 }
 0x40f   : > { %3459 = vrcp.f32 %v2106_v56  ;;  %v2019_v16 = vadd.f32 %v4159_v22, %v2018_v21 }
 0x410   : > { %v3450_v34 = vpop.eup %3449  ;;  %3461 = vrcp.f32 %v2105_v60  ;;  %v3011_v26 = vmul.f32 -1.442695, %v2024_v61 }
 0x411   : > { %v3452_v62 = vpop.eup %3451  ;;  %v2108_v63 = vadd.f32 1.0, %v3450_v34  ;;  %3463 = vpow2.f32 %v3008_v57  ;;  %v3010_v0 = vmul.f32 -1.442695, %v2019_v16  ;;  %v3235_v2 = vpop.f32.mrb[34].mxu1 }
 0x412   : > { %v2107_v3 = vadd.f32 1.0, %v3452_v62  ;;  %3465 = vpow2.f32 %v3011_v26  ;;  %v2034_v6 = vadd.f32 %v3235_v2, %v4159_v22  ;;  %v2028_v28 = vpop.f32.mrb[35].mxu1 }
 0x413   : > { %3467 = vrcp.f32 %v2108_v63  ;;  %v2029_v46 = vadd.f32 %v4159_v22, %v2028_v28 }
 0x414   : > { %v3454_v7 = vpop.eup %3453  ;;  %3469 = vrcp.f32 %v2107_v3  ;;  %v3013_v12 = vmul.f32 -1.442695, %v2034_v6 }
 0x415   : > { %v3456_v41 = vpop.eup %3455  ;;  %v2110_v59 = vadd.f32 1.0, %v3454_v7  ;;  %3471 = vpow2.f32 %v3010_v0  ;;  %v3012_v17 = vmul.f32 -1.442695, %v2029_v46  ;;  %v3238_v24 = vpop.f32.mrb[36].mxu1 }
 0x416   : > { %v2109_v27 = vadd.f32 1.0, %v3456_v41  ;;  %3473 = vpow2.f32 %v3013_v12  ;;  %v2044_v5 = vadd.f32 %v3238_v24, %v4159_v22  ;;  %v2038_v31 = vpop.f32.mrb[37].mxu1 }
 0x417   : > { %3475 = vrcp.f32 %v2110_v59  ;;  %v2039_v30 = vadd.f32 %v4159_v22, %v2038_v31 }
 0x418   : > { %v3458_v15 = vpop.eup %3457  ;;  %3477 = vrcp.f32 %v2109_v27  ;;  %v3015_v32 = vmul.f32 -1.442695, %v2044_v5  ;;  %v2469_v27 = vlaneseq  ;;  %v4244_v5 = vld [vmem:[%s4529_s14] ss:$0 sm:$0xff] }
 0x419   : > { %v4175_v4 = vpop.eup %3459  ;;  %v2112_v33 = vadd.f32 1.0, %v3458_v15  ;;  %3479 = vpow2.f32 %v3012_v17  ;;  %v3014_v37 = vmul.f32 -1.442695, %v2039_v30  ;;  %v3241_v38 = vpop.f32.mrb[38].mxu1  ;;  %v2466_v30 = vld [vmem:[%s4518_s3] sm:$0x1] }
 0x41a   : > { %v4177_v25 = vpop.eup %3461  ;;  %3481 = vpow2.f32 %v3015_v32  ;;  %v2054_v19 = vadd.f32 %v3241_v38, %v4159_v22  ;;  %2643 = vrot.lane.b32.xlu0 %v4175_v4, %s3582_s18  ;;  %v2048_v42 = vpop.f32.mrb[39].mxu1  ;;  %v2470_v31 = vshrl.u32 %v2469_v27, 7  ;;  %v2467_v38 = vsub.f32 1.0, %v2466_v30 }
 0x41b   : > { %v3464_v43 = vpop.eup %3463  ;;  %3483 = vrcp.f32 %v2112_v33  ;;  %v2049_v44 = vadd.f32 %v4159_v22, %v2048_v42  ;;  %2641 = vrot.lane.b32.xlu1 %v4177_v25, %s3582_s18 }
 0x41c   : > { %v3466_v47 = vpop.eup %3465  ;;  %v2111_v48 = vadd.f32 1.0, %v3464_v43  ;;  %3485 = vpow2.f32 %v3014_v37  ;;  %v3017_v45 = vmul.f32 -1.442695, %v2054_v19  ;;  %v2471_v19 = vsub.s32 0, %v2470_v31 }
 0x41d   : > { %v4185_v9 = vpop.eup %3467  ;;  %v2114_v49 = vadd.f32 1.0, %v3466_v47  ;;  %v3016_v50 = vmul.f32 -1.442695, %v2049_v44  ;;  %v2490_v43 = vmul.f32 2.0, %v2466_v30 }
 0x41e   : > { %v4187_v52 = vpop.eup %3469  ;;  %3487 = vrcp.f32 %v2111_v48  ;;  %2647 = vrot.lane.b32.xlu0 %v4185_v9, %s3582_s18 }
 0x41f   : > { %v3472_v53 = vpop.eup %3471  ;;  %3489 = vrcp.f32 %v2114_v49  ;;  %2645 = vrot.lane.b32.xlu1 %v4187_v52, %s3582_s18 }
 0x420   : > { %v3474_v22 = vpop.eup %3473  ;;  %v2113_v20 = vadd.f32 1.0, %v3472_v53  ;;  %3491 = vpow2.f32 %v3017_v45 }
 0x421   : > { %v4193_v56 = vpop.eup %3475  ;;  %v2116_v57 = vadd.f32 1.0, %v3474_v22  ;;  %3493 = vpow2.f32 %v3016_v50  ;;  %v4253_v50 = vrot.slane %v2467_v38, %v2471_v19  ;;  %v4255_v22 = vrot.slane %v2490_v43, %v2471_v19 }
 0x422   : > { %v4195_v1 = vpop.eup %3477  ;;  %3495 = vrcp.f32 %v2113_v20  ;;  %2651 = vrot.lane.b32.xlu0 %v4193_v56, %s3582_s18 }
 0x423   : > { %v3480_v60 = vpop.eup %3479  ;;  %3497 = vrcp.f32 %v2116_v57  ;;  %2649 = vrot.lane.b32.xlu1 %v4195_v1, %s3582_s18 }
 0x424   : > { %v3482_v61 = vpop.eup %3481  ;;  %v2115_v21 = vadd.f32 1.0, %v3480_v60 }
 0x425   : > { %v4201_v16 = vpop.eup %3483  ;;  %v2118_v34 = vadd.f32 1.0, %v3482_v61 }
 0x426   : > { %v3486_v26 = vpop.eup %3485  ;;  %3499 = vrcp.f32 %v2115_v21  ;;  %2655 = vrot.lane.b32.xlu0 %v4201_v16, %s3582_s18 }
 0x427   : > { %3501 = vrcp.f32 %v2118_v34  ;;  %v2117_v62 = vadd.f32 1.0, %v3486_v26  ;;  %v2474_v34 = vsub.f32 %v4253_v50, %v4020_v35 }
 0x428   : > { %v4205_v63 = vpop.eup %3487 }
 0x429   : > { %v4207_v0 = vpop.eup %3489  ;;  %3503 = vrcp.f32 %v2117_v62  ;;  %2653 = vrot.lane.b32.xlu1 %v4205_v63, %s3582_s18  ;;  %v2497_v62 = vmul.f32 %v4255_v22, %v4020_v35 }
 0x42a   : > { %v3492_v2 = vpop.eup %3491  ;;  %2659 = vrot.lane.b32.xlu0 %v4207_v0, %s3582_s18 }
 0x42b   : > { %v3494_v3 = vpop.eup %3493  ;;  %v2120_v6 = vadd.f32 1.0, %v3492_v2  ;;  %v2475_v2 = vsub.f32 %v4253_v50, %v4018_v11 }
 0x42c   : > { %v4213_v28 = vpop.eup %3495  ;;  %v2119_v46 = vadd.f32 1.0, %v3494_v3  ;;  %v2498_v3 = vmul.f32 %v4255_v22, %v4018_v11  ;;  %v2476_v11 = vsub.f32 %v4253_v50, %v4024_v18 }
 0x42d   : > { %v4215_v7 = vpop.eup %3497  ;;  %3505 = vrcp.f32 %v2120_v6  ;;  %2657 = vrot.lane.b32.xlu1 %v4213_v28, %s3582_s18 }
 0x42e   : > { %3507 = vrcp.f32 %v2119_v46  ;;  %2663 = vrot.lane.b32.xlu0 %v4215_v7, %s3582_s18  ;;  %v4271_v35 = vadd.f32 %v2498_v3, %v2475_v2 }
 0x430   : > { %v4221_v12 = vpop.eup %3499 }
 0x431   : > { %v4223_v41 = vpop.eup %3501  ;;  %2661 = vrot.lane.b32.xlu1 %v4221_v12, %s3582_s18 }
 0x432   : > { %2667 = vrot.lane.b32.xlu0 %v4223_v41, %s3582_s18 }
 0x433   : > { %v4229_v59 = vpop.eup %3503 }
 0x435   : > { %2665 = vrot.lane.b32.xlu1 %v4229_v59, %s3582_s18 }
 0x437   : > { %v4233_v17 = vpop.eup %3505 }
 0x438   : > { %v4235_v24 = vpop.eup %3507  ;;  %2671 = vrot.lane.b32.xlu0 %v4233_v17, %s3582_s18 }
 0x439   : > { %2669 = vrot.lane.b32.xlu1 %v4235_v24, %s3582_s18  ;;  %s3585_s18 = smov 16  }
 0x470   : > { %v3246_v15 = vpop.f32.mrb[24].mxu0 }
 0x471   : > { %v2297_v32 = vadd.f32 %v3246_v15, %v4244_v5  ;;  %v2291_v33 = vpop.f32.mrb[25].mxu0 }
 0x472   : > { %v2292_v37 = vadd.f32 %v4244_v5, %v2291_v33 }
 0x473   : > { %v3036_v42 = vmul.f32 -1.442695, %v2297_v32 }
 0x474   : > { %v3035_v44 = vmul.f32 -1.442695, %v2292_v37  ;;  %v3249_v47 = vpop.f32.mrb[26].mxu0  ;;  %v4269_v37 = vadd.f32 %v2497_v62, %v2474_v34  ;;  %v2479_v62 = vsub.f32 %v4253_v50, %v4026_v54 }
 0x475   : > { %3509 = vpow2.f32 %v3036_v42  ;;  %v2307_v48 = vadd.f32 %v3249_v47, %v4244_v5  ;;  %v2301_v45 = vpop.f32.mrb[27].mxu0 }
 0x476   : > { %3511 = vpow2.f32 %v3035_v44  ;;  %v2302_v49 = vadd.f32 %v4244_v5, %v2301_v45  ;;  %v2477_v45 = vsub.f32 %v4253_v50, %v4022_v14 }
 0x477   : > { %v3038_v53 = vmul.f32 -1.442695, %v2307_v48  ;;  %v2499_v48 = vmul.f32 %v4255_v22, %v4024_v18 }
 0x478   : > { %v3037_v20 = vmul.f32 -1.442695, %v2302_v49  ;;  %v3252_v57 = vpop.f32.mrb[28].mxu0 }
 0x479   : > { %3513 = vpow2.f32 %v3038_v53  ;;  %v2317_v60 = vadd.f32 %v3252_v57, %v4244_v5  ;;  %v2311_v61 = vpop.f32.mrb[29].mxu0  ;;  %v2478_v57 = vsub.f32 %v4253_v50, %v4028_v10 }
 0x47a   : > { %3515 = vpow2.f32 %v3037_v20  ;;  %v2312_v21 = vadd.f32 %v4244_v5, %v2311_v61  ;;  %v2500_v20 = vmul.f32 %v4255_v22, %v4022_v14 }
 0x47b   : > { %v3040_v26 = vmul.f32 -1.442695, %v2317_v60 }
 0x47c   : > { %v3039_v6 = vmul.f32 -1.442695, %v2312_v21  ;;  %v3255_v46 = vpop.f32.mrb[30].mxu0  ;;  %v2501_v21 = vmul.f32 %v4255_v22, %v4028_v10 }
 0x47d   : > { %3517 = vpow2.f32 %v3040_v26  ;;  %v2327_v27 = vadd.f32 %v3255_v46, %v4244_v5  ;;  %v2321_v31 = vpop.f32.mrb[31].mxu0  ;;  %v2480_v46 = vsub.f32 %v4253_v50, %v4046_v29 }
 0x47e   : > { %3519 = vpow2.f32 %v3039_v6  ;;  %v2322_v30 = vadd.f32 %v4244_v5, %v2321_v31  ;;  %v2502_v6 = vmul.f32 %v4255_v22, %v4026_v54  ;;  %v2503_v31 = vmul.f32 %v4255_v22, %v4046_v29 }
 0x47f   : > { %v3510_v15 = vpop.eup %3509  ;;  %v3042_v32 = vmul.f32 -1.442695, %v2327_v27 }
 0x480   : > { %v3512_v33 = vpop.eup %3511  ;;  %v2419_v38 = vadd.f32 1.0, %v3510_v15  ;;  %v3041_v19 = vmul.f32 -1.442695, %v2322_v30  ;;  %v3258_v42 = vpop.f32.mrb[32].mxu0  ;;  %v2481_v30 = vsub.f32 %v4253_v50, %v4037_v23 }
 0x481   : > { %v2418_v43 = vadd.f32 1.0, %v3512_v33  ;;  %3521 = vpow2.f32 %v3042_v32  ;;  %v2337_v44 = vadd.f32 %v3258_v42, %v4244_v5  ;;  %v2331_v47 = vpop.f32.mrb[33].mxu0  ;;  %v2504_v33 = vmul.f32 %v4255_v22, %v4037_v23 }
 0x482   : > { %3523 = vrcp.f32 %v2419_v38  ;;  %v2332_v49 = vadd.f32 %v4244_v5, %v2331_v47  ;;  %v4301_v42 = vadd.f32 %v2499_v48, %v2476_v11  ;;  %v2516_v47 = vadd.f32 %v2500_v20, %v2477_v45 }
 0x483   : > { %v3514_v53 = vpop.eup %3513  ;;  %3525 = vrcp.f32 %v2418_v43  ;;  %v3044_v60 = vmul.f32 -1.442695, %v2337_v44  ;;  %v4309_v23 = vadd.f32 %v2503_v31, %v2480_v46  ;;  %v4311_v48 = vadd.f32 %v2504_v33, %v2481_v30 }
 0x484   : > { %v3516_v61 = vpop.eup %3515  ;;  %v2421_v18 = vadd.f32 1.0, %v3514_v53  ;;  %3527 = vpow2.f32 %v3041_v19  ;;  %v3043_v34 = vmul.f32 -1.442695, %v2332_v49  ;;  %v3261_v26 = vpop.f32.mrb[34].mxu0  ;;  %v4304_v49 = vadd.f32 %v2501_v21, %v2478_v57 }
 0x485   : > { %v2420_v2 = vadd.f32 1.0, %v3516_v61  ;;  %3529 = vpow2.f32 %v3044_v60  ;;  %v2347_v14 = vadd.f32 %v3261_v26, %v4244_v5  ;;  %v2341_v3 = vpop.f32.mrb[35].mxu0  ;;  %v4307_v61 = vadd.f32 %v2502_v6, %v2479_v62 }
 0x486   : > { %3531 = vrcp.f32 %v2421_v18  ;;  %v2342_v10 = vadd.f32 %v4244_v5, %v2341_v3  ;;  %v2482_v57 = vsub.f32 %v4253_v50, %v4056_v40  ;;  %v4324_v46 = vmul.f32 %v4255_v22, %v4056_v40 }
 0x487   : > { %v3518_v27 = vpop.eup %3517  ;;  %3533 = vrcp.f32 %v2420_v2  ;;  %v3046_v15 = vmul.f32 -1.442695, %v2347_v14  ;;  %v2483_v33 = vsub.f32 %v4253_v50, %v4054_v51 }
 0x488   : > { %v3520_v32 = vpop.eup %3519  ;;  %v2423_v54 = vadd.f32 1.0, %v3518_v27  ;;  %3535 = vpow2.f32 %v3043_v34  ;;  %v3045_v38 = vmul.f32 -1.442695, %v2342_v10  ;;  %v3264_v19 = vpop.f32.mrb[36].mxu0 }
 0x489   : > { %v2422_v43 = vadd.f32 1.0, %v3520_v32  ;;  %3537 = vpow2.f32 %v3046_v15  ;;  %v2357_v44 = vadd.f32 %v3264_v19, %v4244_v5  ;;  %v2351_v29 = vpop.f32.mrb[37].mxu0 }
 0x48a   : > { %3539 = vrcp.f32 %v2423_v54  ;;  %v2352_v53 = vadd.f32 %v4244_v5, %v2351_v29 }
 0x48b   : > { %v3522_v60 = vpop.eup %3521  ;;  %3541 = vrcp.f32 %v2422_v43  ;;  %v3048_v18 = vmul.f32 -1.442695, %v2357_v44 }
 0x48c   : > { %v3524_v11 = vpop.eup %3523  ;;  %v2425_v34 = vadd.f32 1.0, %v3522_v60  ;;  %3543 = vpow2.f32 %v3045_v38  ;;  %v3047_v26 = vmul.f32 -1.442695, %v2352_v53  ;;  %v3267_v2 = vpop.f32.mrb[38].mxu0 }
 0x48d   : > { %v4313_v45 = vpop.permute.xlu0 %2643  ;;  %v3526_v20 = vpop.eup %3525  ;;  %3545 = vpow2.f32 %v3048_v18  ;;  %v2367_v21 = vadd.f32 %v3267_v2, %v4244_v5  ;;  %v2530_v62 = vsub.f32 %v4175_v4, %v3524_v11  ;;  %2724 = vrot.lane.b32.xlu0 %v3524_v11, %s3585_s18 }
 0x48e   : > { %v4319_v14 = vpop.permute.xlu1 %2641  ;;  %v2361_v3 = vpop.f32.mrb[39].mxu0  ;;  %3547 = vrcp.f32 %v2425_v34  ;;  %v2529_v10 = vsub.f32 %v4177_v25, %v3526_v20  ;;  %2722 = vrot.lane.b32.xlu1 %v3526_v20, %s3585_s18  ;;  %v4335_v25 = vmul.f32 %v4255_v22, %v4054_v51 }
 0x48f   : > { %v3528_v6 = vpop.eup %3527  ;;  %v2362_v27 = vadd.f32 %v4244_v5, %v2361_v3  ;;  %3549 = vpow2.f32 %v3047_v26  ;;  %v3050_v30 = vmul.f32 -1.442695, %v2367_v21  ;;  %v2546_v15 = vmul.f32 %v2530_v62, %v4271_v35 }
 0x490   : > { %v3530_v31 = vpop.eup %3529  ;;  %v2424_v4 = vadd.f32 1.0, %v3528_v6  ;;  %v2545_v38 = vmul.f32 %v2529_v10, %v4269_v37 }
 0x491   : > { %v3532_v32 = vpop.eup %3531  ;;  %v2427_v54 = vadd.f32 1.0, %v3530_v31  ;;  %v3049_v19 = vmul.f32 -1.442695, %v2362_v27  ;;  %v2562_v5 = vadd.f32 %v3524_v11, %v2546_v15  ;;  %v4338_v29 = vpop.permute.xlu0 %2647 }
 0x492   : > { %v3534_v43 = vpop.eup %3533  ;;  %3551 = vrcp.f32 %v2424_v4  ;;  %v2532_v44 = vsub.f32 %v4185_v9, %v3532_v32  ;;  %2728 = vrot.lane.b32.xlu0 %v3532_v32, %s3585_s18  ;;  %v2561_v53 = vadd.f32 %v3526_v20, %v2545_v38  ;;  %v4341_v37 = vpop.permute.xlu1 %2645  ;;  %v2485_v4 = vsub.f32 %v4253_v50, %v4072_v55 }
 0x493   : > { %v3536_v35 = vpop.eup %3535  ;;  %3553 = vrcp.f32 %v2427_v54  ;;  %v2531_v60 = vsub.f32 %v4187_v52, %v3534_v43  ;;  %2726 = vrot.lane.b32.xlu1 %v3534_v43, %s3585_s18  ;;  %v2578_v11 = vmax.f32 %v2562_v5, 1e-08  ;;  %v2508_v38 = vmul.f32 %v4255_v22, %v4072_v55 }
 0x494   : > { %v3538_v18 = vpop.eup %3537  ;;  %v2426_v34 = vadd.f32 1.0, %v3536_v35  ;;  %3555 = vpow2.f32 %v3050_v30  ;;  %v2548_v9 = vmul.f32 %v2532_v44, %v2516_v47  ;;  %v2577_v21 = vmax.f32 %v2561_v53, 1e-08 }
 0x495   : > { %v3540_v26 = vpop.eup %3539  ;;  %v2429_v2 = vadd.f32 1.0, %v3538_v18  ;;  %3557 = vpow2.f32 %v3049_v19  ;;  %v2547_v20 = vmul.f32 %v2531_v60, %v4301_v42  ;;  %v2594_v62 = vmin.f32 %v2578_v11, 1.0 }
 0x496   : > { %v3542_v52 = vpop.eup %3541  ;;  %3559 = vrcp.f32 %v2426_v34  ;;  %v2564_v3 = vadd.f32 %v3532_v32, %v2548_v9  ;;  %v2534_v6 = vsub.f32 %v4193_v56, %v3540_v26  ;;  %2732 = vrot.lane.b32.xlu0 %v3540_v26, %s3585_s18  ;;  %v2593_v10 = vmin.f32 %v2577_v21, 1.0  ;;  %v2652_v32 = vpop.permute.xlu0 %2651 }
 0x497   : > { %v3544_v47 = vpop.eup %3543  ;;  %3561 = vrcp.f32 %v2429_v2  ;;  %v2563_v27 = vadd.f32 %v3534_v43, %v2547_v20  ;;  %v2533_v31 = vsub.f32 %v4195_v1, %v3542_v52  ;;  %2730 = vrot.lane.b32.xlu1 %v3542_v52, %s3585_s18  ;;  %2610 = vst.msk [vmem:[%s4349_s29 + $0x8] sm:$0xff] %vm607_vm0, %v2594_v62  ;;  %v2650_v43 = vpop.permute.xlu1 %2649  ;;  %v2484_v9 = vsub.f32 %v4253_v50, %v4079_v58 }
 0x498   : > { %v3546_v42 = vpop.eup %3545  ;;  %v2428_v30 = vadd.f32 1.0, %v3544_v47  ;;  %v2580_v56 = vmax.f32 %v2564_v3, 1e-08  ;;  %v2550_v15 = vmul.f32 %v2534_v6, %v4307_v61  ;;  %2691 = vst.msk [vmem:[%s4349_s29 + $0x8] sm:$0xff] %vm2689_vm4, %v4313_v45  ;;  %v2510_v47 = vmul.f32 %v4255_v22, %v4092_v8 }
 0x499   : > { %v3548_v54 = vpop.eup %3547  ;;  %v2431_v19 = vadd.f32 1.0, %v3546_v42  ;;  %2609 = vst.msk [vmem:[%s4349_s29] sm:$0xff] %vm607_vm0, %v2593_v10  ;;  %v2579_v1 = vmax.f32 %v2563_v27, 1e-08  ;;  %v2549_v5 = vmul.f32 %v2533_v31, %v4304_v49  ;;  %v2521_v49 = vadd.f32 %v4324_v46, %v2482_v57 }
 0x49a   : > { %v3550_v44 = vpop.eup %3549  ;;  %3563 = vrcp.f32 %v2428_v30  ;;  %2690 = vst.msk [vmem:[%s4349_s29] sm:$0xff] %vm2689_vm4, %v4319_v14  ;;  %v2596_v61 = vmin.f32 %v2580_v56, 1.0  ;;  %v2566_v35 = vadd.f32 %v3540_v26, %v2550_v15  ;;  %v2536_v55 = vsub.f32 %v4201_v16, %v3548_v54  ;;  %2736 = vrot.lane.b32.xlu0 %v3548_v54, %s3585_s18 }
 0x49b   : > { %3565 = vrcp.f32 %v2431_v19  ;;  %v2430_v45 = vadd.f32 1.0, %v3550_v44  ;;  %v2595_v53 = vmin.f32 %v2579_v1, 1.0  ;;  %v2565_v60 = vadd.f32 %v3542_v52, %v2549_v5  ;;  %v2654_v20 = vpop.permute.xlu1 %2653 }
 0x49c   : > { %v3552_v18 = vpop.eup %3551  ;;  %v2522_v14 = vadd.f32 %v4335_v25, %v2483_v33  ;;  %2612 = vst.msk [vmem:[%s4349_s29 + $0x18] sm:$0xff] %vm607_vm0, %v2596_v61  ;;  %v2582_v16 = vmax.f32 %v2566_v35, 1e-08  ;;  %v2552_v34 = vmul.f32 %v2536_v55, %v4311_v48  ;;  %v2507_v46 = vmul.f32 %v4255_v22, %v4079_v58  ;;  %v2656_v25 = vpop.permute.xlu0 %2655 }
 0x49d   : > { %v3554_v11 = vpop.eup %3553  ;;  %3567 = vrcp.f32 %v2430_v45  ;;  %2693 = vst.msk [vmem:[%s4349_s29 + $0x18] sm:$0xff] %vm2689_vm4, %v4338_v29  ;;  %v2581_v40 = vmax.f32 %v2565_v60, 1e-08  ;;  %v2535_v51 = vsub.f32 %v4205_v63, %v3552_v18  ;;  %2734 = vrot.lane.b32.xlu1 %v3552_v18, %s3585_s18  ;;  %v2524_v63 = vadd.f32 %v2508_v38, %v2485_v4 }
 0x49e   : > { %2611 = vst.msk [vmem:[%s4349_s29 + $0x10] sm:$0xff] %vm607_vm0, %v2595_v53  ;;  %v3556_v57 = vpop.eup %3555  ;;  %v2598_v48 = vmin.f32 %v2582_v16, 1.0  ;;  %v2568_v33 = vadd.f32 %v3548_v54, %v2552_v34  ;;  %v2538_v29 = vsub.f32 %v4207_v0, %v3554_v11  ;;  %2740 = vrot.lane.b32.xlu0 %v3554_v11, %s3585_s18  ;;  %v2509_v4 = vmul.f32 %v4255_v22, %v4094_v13 }
 0x49f   : > { %2692 = vst.msk [vmem:[%s4349_s29 + $0x10] sm:$0xff] %vm2689_vm4, %v4341_v37  ;;  %v3558_v26 = vpop.eup %3557  ;;  %v2433_v2 = vadd.f32 1.0, %v3556_v57  ;;  %v2597_v21 = vmin.f32 %v2581_v40, 1.0  ;;  %v2551_v58 = vmul.f32 %v2535_v51, %v4309_v23  ;;  %v2487_v37 = vsub.f32 %v4253_v50, %v4092_v8  ;;  %v2658_v1 = vpop.permute.xlu1 %2657 }
 0x4a0   : > { %v3560_v52 = vpop.eup %3559  ;;  %v2432_v62 = vadd.f32 1.0, %v3558_v26  ;;  %2614 = vst.msk [vmem:[%s4349_s29 + $0x28] sm:$0xff] %vm607_vm0, %v2598_v48  ;;  %v2584_v0 = vmax.f32 %v2568_v33, 1e-08  ;;  %v2554_v3 = vmul.f32 %v2538_v29, %v2522_v14  ;;  %v2486_v8 = vsub.f32 %v4253_v50, %v4094_v13 }
 0x4a1   : > { %v3562_v6 = vpop.eup %3561  ;;  %3569 = vrcp.f32 %v2433_v2  ;;  %2695 = vst.msk [vmem:[%s4349_s29 + $0x28] sm:$0xff] %vm2689_vm4, %v2652_v32  ;;  %v2567_v23 = vadd.f32 %v3552_v18, %v2551_v58  ;;  %v2537_v10 = vsub.f32 %v4213_v28, %v3560_v52  ;;  %2738 = vrot.lane.b32.xlu1 %v3560_v52, %s3585_s18  ;;  %v2660_v32 = vpop.permute.xlu0 %2659  ;;  %v2523_v19 = vadd.f32 %v2507_v46, %v2484_v9 }
 0x4a2   : > { %2613 = vst.msk [vmem:[%s4349_s29 + $0x20] sm:$0xff] %vm607_vm0, %v2597_v21  ;;  %3571 = vrcp.f32 %v2432_v62  ;;  %v2600_v27 = vmin.f32 %v2584_v0, 1.0  ;;  %v2570_v31 = vadd.f32 %v3554_v11, %v2554_v3  ;;  %v2540_v42 = vsub.f32 %v4215_v7, %v3562_v6  ;;  %2744 = vrot.lane.b32.xlu0 %v3562_v6, %s3585_s18 }
 0x4a3   : > { %2694 = vst.msk [vmem:[%s4349_s29 + $0x20] sm:$0xff] %vm2689_vm4, %v2650_v43  ;;  %v2583_v30 = vmax.f32 %v2567_v23, 1e-08  ;;  %v2553_v28 = vmul.f32 %v2537_v10, %v2521_v49  ;;  %v2526_v5 = vadd.f32 %v2510_v47, %v2487_v37  ;;  %v2525_v45 = vadd.f32 %v2509_v4, %v2486_v8 }
 0x4a4   : > { %v3564_v56 = vpop.eup %3563  ;;  %2616 = vst.msk [vmem:[%s4349_s29 + $0x38] sm:$0xff] %vm607_vm0, %v2600_v27  ;;  %v2586_v15 = vmax.f32 %v2570_v31, 1e-08  ;;  %v2556_v54 = vmul.f32 %v2540_v42, %v2524_v63  ;;  %v2489_v53 = vsub.f32 %v4253_v50, %v4110_v36  ;;  %v2488_v16 = vsub.f32 %v4253_v50, %v4117_v39  ;;  %v2662_v50 = vpop.permute.xlu1 %2661 }
 0x4a5   : > { %v3566_v38 = vpop.eup %3565  ;;  %2697 = vst.msk [vmem:[%s4349_s29 + $0x38] sm:$0xff] %vm2689_vm4, %v2656_v25  ;;  %v2599_v7 = vmin.f32 %v2583_v30, 1.0  ;;  %v2569_v43 = vadd.f32 %v3560_v52, %v2553_v28  ;;  %v2539_v13 = vsub.f32 %v4221_v12, %v3564_v56  ;;  %2742 = vrot.lane.b32.xlu1 %v3564_v56, %s3585_s18  ;;  %v2512_v12 = vmul.f32 %v4255_v22, %v4110_v36  ;;  %v2664_v40 = vpop.permute.xlu0 %2663 }
 0x4a6   : > { %v2602_v44 = vmin.f32 %v2586_v15, 1.0  ;;  %v2572_v61 = vadd.f32 %v3562_v6, %v2556_v54  ;;  %v2542_v35 = vsub.f32 %v4223_v41, %v3566_v38  ;;  %2748 = vrot.lane.b32.xlu0 %v3566_v38, %s3585_s18  ;;  %v2511_v34 = vmul.f32 %v4255_v22, %v4117_v39 }
 0x4a7   : > { %v3568_v55 = vpop.eup %3567  ;;  %2615 = vst.msk [vmem:[%s4349_s29 + $0x30] sm:$0xff] %vm607_vm0, %v2599_v7  ;;  %v2585_v60 = vmax.f32 %v2569_v43, 1e-08  ;;  %v2555_v18 = vmul.f32 %v2539_v13, %v2523_v19  ;;  %v2528_v39 = vadd.f32 %v2512_v12, %v2489_v53 }
 0x4a8   : > { %2696 = vst.msk [vmem:[%s4349_s29 + $0x30] sm:$0xff] %vm2689_vm4, %v2654_v20  ;;  %v2588_v41 = vmax.f32 %v2572_v61, 1e-08  ;;  %v2558_v49 = vmul.f32 %v2542_v35, %v2526_v5  ;;  %v2541_v14 = vsub.f32 %v4229_v59, %v3568_v55  ;;  %v2527_v29 = vadd.f32 %v2511_v34, %v2488_v16  ;;  %v2666_v37 = vpop.permute.xlu1 %2665 }
 0x4a9   : > { %2618 = vst.msk [vmem:[%s4349_s29 + $0x48] sm:$0xff] %vm607_vm0, %v2602_v44  ;;  %v2601_v36 = vmin.f32 %v2585_v60, 1.0  ;;  %v2571_v11 = vadd.f32 %v3564_v56, %v2555_v18  ;;  %2746 = vrot.lane.b32.xlu1 %v3568_v55, %s3585_s18  ;;  %v2668_v58 = vpop.permute.xlu0 %2667 }
 0x4aa   : > { %2699 = vst.msk [vmem:[%s4349_s29 + $0x48] sm:$0xff] %vm2689_vm4, %v2660_v32  ;;  %v2604_v9 = vmin.f32 %v2588_v41, 1.0  ;;  %v2574_v51 = vadd.f32 %v3566_v38, %v2558_v49  ;;  %v2557_v57 = vmul.f32 %v2541_v14, %v2525_v45 }
 0x4ab   : > { %v3570_v59 = vpop.eup %3569  ;;  %2617 = vst.msk [vmem:[%s4349_s29 + $0x40] sm:$0xff] %vm607_vm0, %v2601_v36  ;;  %v2587_v46 = vmax.f32 %v2571_v11, 1e-08 }
 0x4ac   : > { %v3572_v48 = vpop.eup %3571  ;;  %2698 = vst.msk [vmem:[%s4349_s29 + $0x40] sm:$0xff] %vm2689_vm4, %v2658_v1  ;;  %v2590_v22 = vmax.f32 %v2574_v51, 1e-08  ;;  %v2573_v33 = vadd.f32 %v3568_v55, %v2557_v57  ;;  %v2544_v25 = vsub.f32 %v4233_v17, %v3570_v59  ;;  %2752 = vrot.lane.b32.xlu0 %v3570_v59, %s3585_s18  ;;  %v2670_v10 = vpop.permute.xlu1 %2669 }
 0x4ad   : > { %2620 = vst.msk [vmem:[%s4349_s29 + $0x58] sm:$0xff] %vm607_vm0, %v2604_v9  ;;  %v2603_v26 = vmin.f32 %v2587_v46, 1.0  ;;  %v2543_v63 = vsub.f32 %v4235_v24, %v3572_v48  ;;  %2750 = vrot.lane.b32.xlu1 %v3572_v48, %s3585_s18  ;;  %v2672_v23 = vpop.permute.xlu0 %2671 }
 0x4ae   : > { %2701 = vst.msk [vmem:[%s4349_s29 + $0x58] sm:$0xff] %vm2689_vm4, %v2664_v40  ;;  %v2606_v2 = vmin.f32 %v2590_v22, 1.0  ;;  %v2589_v21 = vmax.f32 %v2573_v33, 1e-08  ;;  %v2560_v20 = vmul.f32 %v2544_v25, %v2528_v39 }
 0x4af   : > { %2619 = vst.msk [vmem:[%s4349_s29 + $0x50] sm:$0xff] %vm607_vm0, %v2603_v26  ;;  %v2559_v17 = vmul.f32 %v2543_v63, %v2527_v29 }
 0x4b0   : > { %2700 = vst.msk [vmem:[%s4349_s29 + $0x50] sm:$0xff] %vm2689_vm4, %v2662_v50  ;;  %v2605_v52 = vmin.f32 %v2589_v21, 1.0  ;;  %v2576_v24 = vadd.f32 %v3570_v59, %v2560_v20 }
 0x4b1   : > { %2622 = vst.msk [vmem:[%s4349_s29 + $0x68] sm:$0xff] %vm607_vm0, %v2606_v2  ;;  %v2575_v62 = vadd.f32 %v3572_v48, %v2559_v17 }
 0x4b2   : > { %2703 = vst.msk [vmem:[%s4349_s29 + $0x68] sm:$0xff] %vm2689_vm4, %v2668_v58  ;;  %v2592_v0 = vmax.f32 %v2576_v24, 1e-08 }
 0x4b3   : > { %2621 = vst.msk [vmem:[%s4349_s29 + $0x60] sm:$0xff] %vm607_vm0, %v2605_v52  ;;  %v2591_v3 = vmax.f32 %v2575_v62, 1e-08 }
 0x4b4   : > { %2702 = vst.msk [vmem:[%s4349_s29 + $0x60] sm:$0xff] %vm2689_vm4, %v2666_v37  ;;  %v2608_v6 = vmin.f32 %v2592_v0, 1.0 }
 0x4b5   : > { %v2607_v47 = vmin.f32 %v2591_v3, 1.0 }
 0x4b6   : > { %2624 = vst.msk [vmem:[%s4349_s29 + $0x78] sm:$0xff] %vm607_vm0, %v2608_v6 }
 0x4b7   : > { %2705 = vst.msk [vmem:[%s4349_s29 + $0x78] sm:$0xff] %vm2689_vm4, %v2672_v23 }
 0x4b8   : > { %2623 = vst.msk [vmem:[%s4349_s29 + $0x70] sm:$0xff] %vm607_vm0, %v2607_v47 }
 0x4b9   : > { %2704 = vst.msk [vmem:[%s4349_s29 + $0x70] sm:$0xff] %vm2689_vm4, %v2670_v10 }
 0x4ff   : > { %v2725_v27 = vpop.permute.xlu0 %2724 }
 0x500   : > { %2772 = vst.msk [vmem:[%s4349_s29 + $0x8] sm:$0xff] %vm2770_vm5, %v2725_v27  ;;  %v2723_v31 = vpop.permute.xlu1 %2722 }
 0x501   : > { %2771 = vst.msk [vmem:[%s4349_s29] sm:$0xff] %vm2770_vm5, %v2723_v31 }
 0x504   : > { %v2729_v42 = vpop.permute.xlu0 %2728 }
 0x505   : > { %2774 = vst.msk [vmem:[%s4349_s29 + $0x18] sm:$0xff] %vm2770_vm5, %v2729_v42  ;;  %v2727_v8 = vpop.permute.xlu1 %2726 }
 0x506   : > { %2773 = vst.msk [vmem:[%s4349_s29 + $0x10] sm:$0xff] %vm2770_vm5, %v2727_v8 }
 0x508   : > { %v2733_v4 = vpop.permute.xlu0 %2732 }
 0x509   : > { %2776 = vst.msk [vmem:[%s4349_s29 + $0x28] sm:$0xff] %vm2770_vm5, %v2733_v4  ;;  %v2731_v30 = vpop.permute.xlu1 %2730 }
 0x50a   : > { %2775 = vst.msk [vmem:[%s4349_s29 + $0x20] sm:$0xff] %vm2770_vm5, %v2731_v30 }
 0x50c   : > { %v2737_v28 = vpop.permute.xlu0 %2736 }
 0x50d   : > { %2778 = vst.msk [vmem:[%s4349_s29 + $0x38] sm:$0xff] %vm2770_vm5, %v2737_v28 }
 0x50f   : > { %v2735_v56 = vpop.permute.xlu1 %2734 }
 0x510   : > { %2777 = vst.msk [vmem:[%s4349_s29 + $0x30] sm:$0xff] %vm2770_vm5, %v2735_v56  ;;  %v2741_v15 = vpop.permute.xlu0 %2740 }
 0x511   : > { %2780 = vst.msk [vmem:[%s4349_s29 + $0x48] sm:$0xff] %vm2770_vm5, %v2741_v15 }
 0x513   : > { %v2739_v32 = vpop.permute.xlu1 %2738 }
 0x514   : > { %2779 = vst.msk [vmem:[%s4349_s29 + $0x40] sm:$0xff] %vm2770_vm5, %v2739_v32  ;;  %v2745_v54 = vpop.permute.xlu0 %2744 }
 0x515   : > { %2782 = vst.msk [vmem:[%s4349_s29 + $0x58] sm:$0xff] %vm2770_vm5, %v2745_v54 }
 0x517   : > { %v2743_v38 = vpop.permute.xlu1 %2742 }
 0x518   : > { %2781 = vst.msk [vmem:[%s4349_s29 + $0x50] sm:$0xff] %vm2770_vm5, %v2743_v38  ;;  %v2749_v19 = vpop.permute.xlu0 %2748 }
 0x519   : > { %2784 = vst.msk [vmem:[%s4349_s29 + $0x68] sm:$0xff] %vm2770_vm5, %v2749_v19 }
 0x51b   : > { %v2747_v7 = vpop.permute.xlu1 %2746 }
 0x51c   : > { %2783 = vst.msk [vmem:[%s4349_s29 + $0x60] sm:$0xff] %vm2770_vm5, %v2747_v7 }
 0x51e   : > { %v2753_v1 = vpop.permute.xlu0 %2752 }
 0x51f   : > { %2786 = vst.msk [vmem:[%s4349_s29 + $0x78] sm:$0xff] %vm2770_vm5, %v2753_v1  ;;  %v2751_v43 = vpop.permute.xlu1 %2750 }
 0x520   : > { %2785 = vst.msk [vmem:[%s4349_s29 + $0x70] sm:$0xff] %vm2770_vm5, %v2751_v43 }
 0x521 PF: > { %s27_s21 = sadd.s32 1, %s3579_s21  }
 0x522   : > { %p24_p4 = scmp.ge.s32.totalorder %s27_s21, 6  }
 0x524   :  { %26 = sbr.rel (!%p24_p4) target bundleno = 2 (0x2), region = 128 }

</bundles_post_ra>
